<compile_context>
chip_gen: v5e
topology: v5e:2x2
jax: 0.10.0
libtpu: 0.0.40
codegen_flags: <defaults>
</compile_context>

<pallas_src>
import functools

import jax
import jax.numpy as jnp
from jax.experimental import pallas as pl
from jax.experimental.pallas import tpu as pltpu


# --------------------------------------------------------------------------- #
# Pass 1: online-softmax reduction over HW tiles -> per-batch channel gate
# --------------------------------------------------------------------------- #
def fbc_reduce_kernel(x_ref, wq_w_ref, wv_w_ref, wv_b_ref, wz_w_ref, wz_b_ref,
                      gamma_ref, beta_ref, gate_ref, m_sc, l_sc, acc_sc):
    t = pl.program_id(1)

    @pl.when(t == 0)
    def _():
        m_sc[...] = jnp.full_like(m_sc, -jnp.inf)
        l_sc[...] = jnp.zeros_like(l_sc)
        acc_sc[...] = jnp.zeros_like(acc_sc)

    x = x_ref[0]                                                    # (C, Thw) bf16

    # ch_wq logits for this tile.  The conv bias is a constant over pixels and
    # cancels inside the softmax, so it is not applied here.
    q = jnp.dot(wq_w_ref[...], x,
                preferred_element_type=jnp.float32)                 # (1, Thw) f32

    m_prev = m_sc[...]                                              # (1, 1)
    m_new = jnp.maximum(m_prev, jnp.max(q, axis=-1, keepdims=True))
    corr = jnp.exp(m_prev - m_new)                                  # (1, 1)
    p = jnp.exp(q - m_new)                                          # (1, Thw)

    l_sc[...] = corr * l_sc[...] + jnp.sum(p, axis=-1, keepdims=True)
    # running  sum_p exp(q_p) * x[:, p]   (lane reduce, kept in f32)
    acc_sc[...] = corr * acc_sc[...] + jnp.sum(
        x.astype(jnp.float32) * p, axis=-1, keepdims=True)          # (C, 1)
    m_sc[...] = m_new

    @pl.when(t == pl.num_programs(1) - 1)
    def _():
        # softmax-weighted mean of x; normalization folded into one reciprocal.
        s = acc_sc[...] * pl.reciprocal(l_sc[...], approx=True)     # (C, 1)
        # wz = W_wv @ s + b_wv   (exact: softmax weights sum to 1)
        wz = jnp.dot(wv_w_ref[...], s.astype(jnp.bfloat16),
                     preferred_element_type=jnp.float32) + wv_b_ref[...]   # (C/2,1)
        # ch_wz: C/2 -> C
        z = jnp.dot(wz_w_ref[...], wz.astype(jnp.bfloat16),
                    preferred_element_type=jnp.float32) + wz_b_ref[...]    # (C, 1)
        # LayerNorm over channels, then sigmoid -> channel gate
        mu = jnp.mean(z, axis=0, keepdims=True)
        var = jnp.mean((z - mu) ** 2, axis=0, keepdims=True)
        zn = (z - mu) * jax.lax.rsqrt(var + 1e-5)
        gate_ref[0] = jax.nn.sigmoid(zn * gamma_ref[...] + beta_ref[...])  # (C, 1)


# --------------------------------------------------------------------------- #
# Pass 2: gate + final 1x1 conv on lane-dense HW tiles
# --------------------------------------------------------------------------- #
def fbc_apply_kernel(gate_ref, x_ref, conv_w_ref, conv_b_ref, out_ref):
    x = x_ref[0]                                                    # (C, Thw) bf16
    scale = (1.0 + gate_ref[0]).astype(jnp.bfloat16)                # (C, 1)
    y = x * scale                                                   # (C, Thw) bf16
    out = jnp.dot(conv_w_ref[...], y,
                  preferred_element_type=jnp.float32) + conv_b_ref[...]
    out_ref[0] = out                                                # (C_out, Thw) f32


# --------------------------------------------------------------------------- #
# Wrapper
# --------------------------------------------------------------------------- #
def _pick_hw_tile(hw, target=512):
    """Largest multiple of 128 that divides hw and is <= target; else hw."""
    if hw % 128 == 0:
        t = min(hw, max(128, (target // 128) * 128))
        while hw % t:
            t -= 128
        return t
    return hw


def fbc_forward(x_nchw, params, *, t_hw=None):
    b, c, h, w = x_nchw.shape
    hw = h * w
    c_half = c // 2
    c_out = params["w_conv"].shape[0]

    if t_hw is None:
        t_hw = _pick_hw_tile(hw)
    assert hw % t_hw == 0, "HW must be divisible by the HW tile size"
    n_t = hw // t_hw

    # Free reshape (no transpose); bf16 feed for the MXU, f32 accumulation inside.
    x = x_nchw.reshape(b, c, hw).astype(jnp.bfloat16)
    w_wq = params["w_wq"].astype(jnp.bfloat16)
    w_wv = params["w_wv"].astype(jnp.bfloat16)
    w_wz = params["w_wz"].astype(jnp.bfloat16)
    w_conv = params["w_conv"].astype(jnp.bfloat16)

    # Per-step footprint ~ 2 * (C * t_hw * 2B) per x/out stream plus the small
    # weights -> 32 MiB scoped VMEM is ample and stays under v7x's 64 MiB.
    def cparams(sem):
        return pltpu.CompilerParams(dimension_semantics=sem,
                                    vmem_limit_bytes=32 * 1024 * 1024)

    const = lambda i, t: (0, 0)

    # ---- pass 1: per-batch channel gate ------------------------------------
    gate = pl.pallas_call(
        fbc_reduce_kernel,
        out_shape=jax.ShapeDtypeStruct((b, c, 1), jnp.float32),
        grid_spec=pltpu.PrefetchScalarGridSpec(
            num_scalar_prefetch=0,
            grid=(b, n_t),
            in_specs=[
                pl.BlockSpec((1, c, t_hw), lambda i, t: (i, 0, t)),   # x tile
                pl.BlockSpec((1, c), const),          # w_wq  (bf16)
                pl.BlockSpec((c_half, c), const),     # w_wv  (bf16)
                pl.BlockSpec((c_half, 1), const),     # b_wv
                pl.BlockSpec((c, c_half), const),     # w_wz  (bf16)
                pl.BlockSpec((c, 1), const),          # b_wz
                pl.BlockSpec((c, 1), const),          # ln gamma
                pl.BlockSpec((c, 1), const),          # ln beta
            ],
            out_specs=pl.BlockSpec((1, c, 1), lambda i, t: (i, 0, 0)),
            scratch_shapes=[
                pltpu.VMEM((1, 1), jnp.float32),      # running max
                pltpu.VMEM((1, 1), jnp.float32),      # running sum(exp)
                pltpu.VMEM((c, 1), jnp.float32),      # running sum(exp * x)
            ]),
        compiler_params=cparams(("parallel", "arbitrary")),
    )(x, w_wq, w_wv, params["b_wv"], w_wz, params["b_wz"],
      params["gamma"], params["beta"])

    # ---- pass 2: gated residual + final 1x1 conv ---------------------------
    out = pl.pallas_call(
        fbc_apply_kernel,
        out_shape=jax.ShapeDtypeStruct((b, c_out, hw), jnp.float32),
        grid_spec=pltpu.PrefetchScalarGridSpec(
            num_scalar_prefetch=0,
            grid=(b, n_t),
            in_specs=[
                pl.BlockSpec((1, c, 1), lambda i, t: (i, 0, 0)),      # gate
                pl.BlockSpec((1, c, t_hw), lambda i, t: (i, 0, t)),   # x tile
                pl.BlockSpec((c_out, c), const),      # w_conv (bf16)
                pl.BlockSpec((c_out, 1), const),      # b_conv
            ],
            out_specs=pl.BlockSpec((1, c_out, t_hw), lambda i, t: (i, 0, t))),
        compiler_params=cparams(("parallel", "parallel")),
    )(gate, x, w_conv, params["b_conv"])

    return out.reshape(b, c_out, h, w)


# --------------------------------------------------------------------------- #
# Params (PyTorch Conv2d-style init), weights stored as (out_ch, in_ch)
# --------------------------------------------------------------------------- #
def init_params(key, channel, channel_out):
    c_half = channel // 2
    ks = jax.random.split(key, 8)

    def uni(k, shape, fan_in):
        bound = 1.0 / jnp.sqrt(fan_in)
        return jax.random.uniform(k, shape, jnp.float32, -bound, bound)

    return {
        "w_wv": uni(ks[0], (c_half, channel), channel),
        "b_wv": uni(ks[1], (c_half, 1), channel),
        "w_wq": uni(ks[2], (1, channel), channel),
        "b_wq": uni(ks[3], (1, 1), channel),     # unused in kernel: softmax shift-invariant
        "w_wz": uni(ks[4], (channel, c_half), c_half),
        "b_wz": uni(ks[5], (channel, 1), c_half),
        "gamma": jnp.ones((channel, 1), jnp.float32),
        "beta": jnp.zeros((channel, 1), jnp.float32),
        "w_conv": uni(ks[6], (channel_out, channel), channel),
        "b_conv": uni(ks[7], (channel_out, 1), channel),
    }


def fbc_reference(x_nchw, params):
    """Pure-JAX f32 reference mirroring the PyTorch forward exactly."""
    b, c, h, w = x_nchw.shape
    x = x_nchw.reshape(b, c, h * w)                                   # (B, C, HW)
    wv = jnp.einsum("oc,bcp->bop", params["w_wv"], x) + params["b_wv"]
    wq = jnp.einsum("oc,bcp->bop", params["w_wq"], x) + params["b_wq"]
    wq = jax.nn.softmax(wq, axis=-1)                                  # softmax over HW
    wz = jnp.einsum("bop,bqp->boq", wv, wq)                           # (B, C/2, 1)
    z = jnp.einsum("oc,bcq->boq", params["w_wz"], wz) + params["b_wz"]
    mu = jnp.mean(z, axis=1, keepdims=True)
    var = jnp.mean((z - mu) ** 2, axis=1, keepdims=True)
    zn = (z - mu) / jnp.sqrt(var + 1e-5)
    gate = jax.nn.sigmoid(zn * params["gamma"] + params["beta"])      # (B, C, 1)
    y = x * (1.0 + gate)
    out = jnp.einsum("oc,bcp->bop", params["w_conv"], y) + params["b_conv"]
    return out.reshape(b, -1, h, w)


if __name__ == "__main__":
    B, C, H, W = 2, 64, 16, 16        # channel=64, HW=256
    C_OUT = 32

    key = jax.random.PRNGKey(0)
    kx, kp = jax.random.split(key)
    x = jax.random.normal(kx, (B, C, H, W), jnp.float32)
    params = init_params(kp, C, C_OUT)

    # t_hw=128 -> 2 HW tiles per batch, exercising the online-softmax reduction.
    fwd = jax.jit(functools.partial(fbc_forward, t_hw=128))
    out = jax.block_until_ready(fwd(x, params))
    ref = jax.block_until_ready(fbc_reference(x, params))

    assert out.shape == (B, C_OUT, H, W)
    max_err = float(jnp.max(jnp.abs(out - ref)))
    assert jnp.allclose(out, ref, atol=5e-2, rtol=5e-2), f"mismatch vs reference: {max_err}"
    print("KERNEL_OK")
</pallas_src>

<mosaic_0001>
module attributes {stable_mosaic.version = 11 : i64} {
  func.func @fbc_apply_kernel(%arg0: i32, %arg1: i32, %arg2: memref<1x64x1xf32, #tpu.memory_space<vmem>>, %arg3: memref<1x64x128xbf16, #tpu.memory_space<vmem>>, %arg4: memref<32x64xbf16, #tpu.memory_space<vmem>>, %arg5: memref<32x1xf32, #tpu.memory_space<vmem>>, %arg6: memref<1x32x128xf32, #tpu.memory_space<vmem>>) attributes {dimension_semantics = [#tpu.dimension_semantics<parallel>, #tpu.dimension_semantics<parallel>], iteration_bounds = array<i64: 2, 2>, scalar_prefetch = 0 : i64, scratch_operands = 0 : i64, tpu.core_type = #tpu.core_type<tc>, window_params = [{transform_indices = @transform_0, window_bounds = array<i64: 1, 64, 1>}, {transform_indices = @transform_1, window_bounds = array<i64: 1, 64, 128>}, {pipeline_mode = #tpu.pipeline_mode<synchronous>, transform_indices = @transform_2, window_bounds = array<i64: 32, 64>}, {pipeline_mode = #tpu.pipeline_mode<synchronous>, transform_indices = @transform_3, window_bounds = array<i64: 32, 1>}, {transform_indices = @transform_4, window_bounds = array<i64: 1, 32, 128>}]} {
    %c0 = arith.constant 0 : index
    %c0_0 = arith.constant 0 : index
    %c0_1 = arith.constant 0 : index
    %0 = vector.load %arg3[%c0, %c0_0, %c0_1] : memref<1x64x128xbf16, #tpu.memory_space<vmem>>, vector<1x64x128xbf16>
    %1 = vector.shape_cast %0 : vector<1x64x128xbf16> to vector<64x128xbf16>
    %c0_2 = arith.constant 0 : index
    %c0_3 = arith.constant 0 : index
    %c0_4 = arith.constant 0 : index
    %2 = vector.load %arg2[%c0_2, %c0_3, %c0_4] : memref<1x64x1xf32, #tpu.memory_space<vmem>>, vector<1x64x1xf32>
    %3 = vector.shape_cast %2 : vector<1x64x1xf32> to vector<64x1xf32>
    %cst = arith.constant 1.000000e+00 : f32
    %4 = vector.broadcast %cst : f32 to vector<64x1xf32>
    %5 = arith.addf %4, %3 : vector<64x1xf32>
    %6 = arith.truncf %5 : vector<64x1xf32> to vector<64x1xbf16>
    %7 = vector.broadcast %6 : vector<64x1xbf16> to vector<64x128xbf16>
    %8 = arith.mulf %1, %7 : vector<64x128xbf16>
    %c0_5 = arith.constant 0 : index
    %c0_6 = arith.constant 0 : index
    %9 = vector.load %arg4[%c0_5, %c0_6] : memref<32x64xbf16, #tpu.memory_space<vmem>>, vector<32x64xbf16>
    %cst_7 = arith.constant dense<0.000000e+00> : vector<32x128xf32>
    %10 = tpu.matmul %9, %8, %cst_7 {dimension_numbers = #tpu.dot_dimension_numbers<[1], [0], [0], [1], [0, 0, 1, 1], [], []>} : vector<32x64xbf16>, vector<64x128xbf16>, vector<32x128xf32> -> vector<32x128xf32>
    %c0_8 = arith.constant 0 : index
    %c0_9 = arith.constant 0 : index
    %11 = vector.load %arg5[%c0_8, %c0_9] : memref<32x1xf32, #tpu.memory_space<vmem>>, vector<32x1xf32>
    %12 = vector.broadcast %11 : vector<32x1xf32> to vector<32x128xf32>
    %13 = arith.addf %10, %12 : vector<32x128xf32>
    %c0_10 = arith.constant 0 : index
    %c0_11 = arith.constant 0 : index
    %c0_12 = arith.constant 0 : index
    %14 = vector.load %arg6[%c0_10, %c0_11, %c0_12] : memref<1x32x128xf32, #tpu.memory_space<vmem>>, vector<1x32x128xf32>
    %15 = vector.shape_cast %14 : vector<1x32x128xf32> to vector<32x128xf32>
    %16 = vector.shape_cast %13 : vector<32x128xf32> to vector<1x32x128xf32>
    tpu.vector_store %arg6[%c0_10, %c0_11, %c0_12], %16 {strides = array<i32>} : memref<1x32x128xf32, #tpu.memory_space<vmem>>, vector<1x32x128xf32>,
    return
  }
  func.func @transform_0(%arg0: i32, %arg1: i32) -> (i32, i32, i32) {
    %c0_i32 = arith.constant 0 : i32
    %c0_i32_0 = arith.constant 0 : i32
    %c0_i32_1 = arith.constant 0 : i32
    return %arg0, %c0_i32, %c0_i32_0 : i32, i32, i32
  }
  func.func @transform_1(%arg0: i32, %arg1: i32) -> (i32, i32, i32) {
    %c0_i32 = arith.constant 0 : i32
    %c0_i32_0 = arith.constant 0 : i32
    return %arg0, %c0_i32, %arg1 : i32, i32, i32
  }
  func.func @transform_2(%arg0: i32, %arg1: i32) -> (i32, i32) {
    %c0_i32 = arith.constant 0 : i32
    %c0_i32_0 = arith.constant 0 : i32
    %c0_i32_1 = arith.constant 0 : i32
    return %c0_i32, %c0_i32_0 : i32, i32
  }
  func.func @transform_3(%arg0: i32, %arg1: i32) -> (i32, i32) {
    %c0_i32 = arith.constant 0 : i32
    %c0_i32_0 = arith.constant 0 : i32
    %c0_i32_1 = arith.constant 0 : i32
    return %c0_i32, %c0_i32_0 : i32, i32
  }
  func.func @transform_4(%arg0: i32, %arg1: i32) -> (i32, i32, i32) {
    %c0_i32 = arith.constant 0 : i32
    %c0_i32_0 = arith.constant 0 : i32
    return %arg0, %c0_i32, %arg1 : i32, i32, i32
  }
}

module attributes {stable_mosaic.version = 11 : i64} {
  func.func @fbc_reduce_kernel(%arg0: i32, %arg1: i32, %arg2: memref<1x64x128xbf16, #tpu.memory_space<vmem>>, %arg3: memref<1x64xbf16, #tpu.memory_space<vmem>>, %arg4: memref<32x64xbf16, #tpu.memory_space<vmem>>, %arg5: memref<32x1xf32, #tpu.memory_space<vmem>>, %arg6: memref<64x32xbf16, #tpu.memory_space<vmem>>, %arg7: memref<64x1xf32, #tpu.memory_space<vmem>>, %arg8: memref<64x1xf32, #tpu.memory_space<vmem>>, %arg9: memref<64x1xf32, #tpu.memory_space<vmem>>, %arg10: memref<1x64x1xf32, #tpu.memory_space<vmem>>, %arg11: memref<1x1xf32, #tpu.memory_space<vmem>>, %arg12: memref<1x1xf32, #tpu.memory_space<vmem>>, %arg13: memref<64x1xf32, #tpu.memory_space<vmem>>) attributes {dimension_semantics = [#tpu.dimension_semantics<parallel>, #tpu.dimension_semantics<arbitrary>], iteration_bounds = array<i64: 2, 2>, scalar_prefetch = 0 : i64, scratch_operands = 3 : i64, tpu.core_type = #tpu.core_type<tc>, window_params = [{transform_indices = @transform_0, window_bounds = array<i64: 1, 64, 128>}, {pipeline_mode = #tpu.pipeline_mode<synchronous>, transform_indices = @transform_1, window_bounds = array<i64: 1, 64>}, {pipeline_mode = #tpu.pipeline_mode<synchronous>, transform_indices = @transform_2, window_bounds = array<i64: 32, 64>}, {pipeline_mode = #tpu.pipeline_mode<synchronous>, transform_indices = @transform_3, window_bounds = array<i64: 32, 1>}, {pipeline_mode = #tpu.pipeline_mode<synchronous>, transform_indices = @transform_4, window_bounds = array<i64: 64, 32>}, {pipeline_mode = #tpu.pipeline_mode<synchronous>, transform_indices = @transform_5, window_bounds = array<i64: 64, 1>}, {pipeline_mode = #tpu.pipeline_mode<synchronous>, transform_indices = @transform_6, window_bounds = array<i64: 64, 1>}, {pipeline_mode = #tpu.pipeline_mode<synchronous>, transform_indices = @transform_7, window_bounds = array<i64: 64, 1>}, {transform_indices = @transform_8, window_bounds = array<i64: 1, 64, 1>}]} {
    %c0_i32 = arith.constant 0 : i32
    %0 = arith.cmpi eq, %arg1, %c0_i32 : i32
    %1 = arith.extui %0 : i1 to i32
    %c0_i32_0 = arith.constant 0 : i32
    %2 = arith.cmpi ne, %1, %c0_i32_0 : i32
    scf.if %2 {
      %cst_21 = arith.constant 0xFF800000 : f32
      %36 = vector.broadcast %cst_21 : f32 to vector<1x1xf32>
      %c0_22 = arith.constant 0 : index
      %c0_23 = arith.constant 0 : index
      %37 = vector.load %arg11[%c0_22, %c0_23] : memref<1x1xf32, #tpu.memory_space<vmem>>, vector<1x1xf32>
      tpu.vector_store %arg11[%c0_22, %c0_23], %36 {strides = array<i32>} : memref<1x1xf32, #tpu.memory_space<vmem>>, vector<1x1xf32>,
      %cst_24 = arith.constant 0.000000e+00 : f32
      %38 = vector.broadcast %cst_24 : f32 to vector<1x1xf32>
      %c0_25 = arith.constant 0 : index
      %c0_26 = arith.constant 0 : index
      %39 = vector.load %arg12[%c0_25, %c0_26] : memref<1x1xf32, #tpu.memory_space<vmem>>, vector<1x1xf32>
      tpu.vector_store %arg12[%c0_25, %c0_26], %38 {strides = array<i32>} : memref<1x1xf32, #tpu.memory_space<vmem>>, vector<1x1xf32>,
      %cst_27 = arith.constant 0.000000e+00 : f32
      %40 = vector.broadcast %cst_27 : f32 to vector<64x1xf32>
      %c0_28 = arith.constant 0 : index
      %c0_29 = arith.constant 0 : index
      %41 = vector.load %arg13[%c0_28, %c0_29] : memref<64x1xf32, #tpu.memory_space<vmem>>, vector<64x1xf32>
      tpu.vector_store %arg13[%c0_28, %c0_29], %40 {strides = array<i32>} : memref<64x1xf32, #tpu.memory_space<vmem>>, vector<64x1xf32>,
    } else {
    }
    %c0 = arith.constant 0 : index
    %c0_1 = arith.constant 0 : index
    %c0_2 = arith.constant 0 : index
    %3 = vector.load %arg2[%c0, %c0_1, %c0_2] : memref<1x64x128xbf16, #tpu.memory_space<vmem>>, vector<1x64x128xbf16>
    %4 = vector.shape_cast %3 : vector<1x64x128xbf16> to vector<64x128xbf16>
    %c0_3 = arith.constant 0 : index
    %c0_4 = arith.constant 0 : index
    %5 = vector.load %arg3[%c0_3, %c0_4] : memref<1x64xbf16, #tpu.memory_space<vmem>>, vector<1x64xbf16>
    %cst = arith.constant dense<0.000000e+00> : vector<1x128xf32>
    %6 = tpu.matmul %5, %4, %cst {dimension_numbers = #tpu.dot_dimension_numbers<[1], [0], [0], [1], [0, 0, 1, 1], [], []>} : vector<1x64xbf16>, vector<64x128xbf16>, vector<1x128xf32> -> vector<1x128xf32>
    %c0_5 = arith.constant 0 : index
    %c0_6 = arith.constant 0 : index
    %7 = vector.load %arg11[%c0_5, %c0_6] : memref<1x1xf32, #tpu.memory_space<vmem>>, vector<1x1xf32>
    %cst_7 = arith.constant dense<0xFF800000> : vector<1xf32>
    %8 = vector.multi_reduction <maximumf>, %6, %cst_7 [1] : vector<1x128xf32> to vector<1xf32>
    %9 = vector.shape_cast %8 : vector<1xf32> to vector<1x1xf32>
    %10 = arith.maximumf %7, %9 : vector<1x1xf32>
    %11 = arith.subf %7, %10 : vector<1x1xf32>
    %12 = math.exp %11 : vector<1x1xf32>
    %13 = vector.broadcast %10 : vector<1x1xf32> to vector<1x128xf32>
    %14 = arith.subf %6, %13 : vector<1x128xf32>
    %15 = math.exp %14 : vector<1x128xf32>
    %c0_8 = arith.constant 0 : index
    %c0_9 = arith.constant 0 : index
    %16 = vector.load %arg12[%c0_8, %c0_9] : memref<1x1xf32, #tpu.memory_space<vmem>>, vector<1x1xf32>
    %17 = arith.mulf %12, %16 : vector<1x1xf32>
    %cst_10 = arith.constant dense<0.000000e+00> : vector<1xf32>
    %18 = vector.multi_reduction <add>, %15, %cst_10 [1] : vector<1x128xf32> to vector<1xf32>
    %19 = vector.shape_cast %18 : vector<1xf32> to vector<1x1xf32>
    %20 = arith.addf %17, %19 : vector<1x1xf32>
    %c0_11 = arith.constant 0 : index
    %c0_12 = arith.constant 0 : index
    %21 = vector.load %arg12[%c0_11, %c0_12] : memref<1x1xf32, #tpu.memory_space<vmem>>, vector<1x1xf32>
    tpu.vector_store %arg12[%c0_11, %c0_12], %20 {strides = array<i32>} : memref<1x1xf32, #tpu.memory_space<vmem>>, vector<1x1xf32>,
    %c0_13 = arith.constant 0 : index
    %c0_14 = arith.constant 0 : index
    %22 = vector.load %arg13[%c0_13, %c0_14] : memref<64x1xf32, #tpu.memory_space<vmem>>, vector<64x1xf32>
    %23 = vector.broadcast %12 : vector<1x1xf32> to vector<64x1xf32>
    %24 = arith.mulf %23, %22 : vector<64x1xf32>
    %25 = arith.extf %4 : vector<64x128xbf16> to vector<64x128xf32>
    %26 = vector.broadcast %15 : vector<1x128xf32> to vector<64x128xf32>
    %27 = arith.mulf %25, %26 : vector<64x128xf32>
    %cst_15 = arith.constant dense<0.000000e+00> : vector<64xf32>
    %28 = vector.multi_reduction <add>, %27, %cst_15 [1] : vector<64x128xf32> to vector<64xf32>
    %29 = vector.shape_cast %28 : vector<64xf32> to vector<64x1xf32>
    %30 = arith.addf %24, %29 : vector<64x1xf32>
    %c0_16 = arith.constant 0 : index
    %c0_17 = arith.constant 0 : index
    %31 = vector.load %arg13[%c0_16, %c0_17] : memref<64x1xf32, #tpu.memory_space<vmem>>, vector<64x1xf32>
    tpu.vector_store %arg13[%c0_16, %c0_17], %30 {strides = array<i32>} : memref<64x1xf32, #tpu.memory_space<vmem>>, vector<64x1xf32>,
    %c0_18 = arith.constant 0 : index
    %c0_19 = arith.constant 0 : index
    %32 = vector.load %arg11[%c0_18, %c0_19] : memref<1x1xf32, #tpu.memory_space<vmem>>, vector<1x1xf32>
    tpu.vector_store %arg11[%c0_18, %c0_19], %10 {strides = array<i32>} : memref<1x1xf32, #tpu.memory_space<vmem>>, vector<1x1xf32>,
    %c1_i32 = arith.constant 1 : i32
    %33 = arith.cmpi eq, %arg1, %c1_i32 : i32
    %34 = arith.extui %33 : i1 to i32
    %c0_i32_20 = arith.constant 0 : i32
    %35 = arith.cmpi ne, %34, %c0_i32_20 : i32
    scf.if %35 {
      %c0_21 = arith.constant 0 : index
      %c0_22 = arith.constant 0 : index
      %36 = vector.load %arg13[%c0_21, %c0_22] : memref<64x1xf32, #tpu.memory_space<vmem>>, vector<64x1xf32>
      %c0_23 = arith.constant 0 : index
      %c0_24 = arith.constant 0 : index
      %37 = vector.load %arg12[%c0_23, %c0_24] : memref<1x1xf32, #tpu.memory_space<vmem>>, vector<1x1xf32>
      %38 = tpu.reciprocal %37 {approx = true} : vector<1x1xf32> -> vector<1x1xf32>
      %39 = vector.broadcast %38 : vector<1x1xf32> to vector<64x1xf32>
      %40 = arith.mulf %36, %39 : vector<64x1xf32>
      %c0_25 = arith.constant 0 : index
      %c0_26 = arith.constant 0 : index
      %41 = vector.load %arg4[%c0_25, %c0_26] : memref<32x64xbf16, #tpu.memory_space<vmem>>, vector<32x64xbf16>
      %42 = arith.truncf %40 : vector<64x1xf32> to vector<64x1xbf16>
      %cst_27 = arith.constant dense<0.000000e+00> : vector<32x1xf32>
      %43 = tpu.matmul %41, %42, %cst_27 {dimension_numbers = #tpu.dot_dimension_numbers<[1], [0], [0], [1], [0, 0, 1, 1], [], []>} : vector<32x64xbf16>, vector<64x1xbf16>, vector<32x1xf32> -> vector<32x1xf32>
      %c0_28 = arith.constant 0 : index
      %c0_29 = arith.constant 0 : index
      %44 = vector.load %arg5[%c0_28, %c0_29] : memref<32x1xf32, #tpu.memory_space<vmem>>, vector<32x1xf32>
      %45 = arith.addf %43, %44 : vector<32x1xf32>
      %c0_30 = arith.constant 0 : index
      %c0_31 = arith.constant 0 : index
      %46 = vector.load %arg6[%c0_30, %c0_31] : memref<64x32xbf16, #tpu.memory_space<vmem>>, vector<64x32xbf16>
      %47 = arith.truncf %45 : vector<32x1xf32> to vector<32x1xbf16>
      %cst_32 = arith.constant dense<0.000000e+00> : vector<64x1xf32>
      %48 = tpu.matmul %46, %47, %cst_32 {dimension_numbers = #tpu.dot_dimension_numbers<[1], [0], [0], [1], [0, 0, 1, 1], [], []>} : vector<64x32xbf16>, vector<32x1xbf16>, vector<64x1xf32> -> vector<64x1xf32>
      %c0_33 = arith.constant 0 : index
      %c0_34 = arith.constant 0 : index
      %49 = vector.load %arg7[%c0_33, %c0_34] : memref<64x1xf32, #tpu.memory_space<vmem>>, vector<64x1xf32>
      %50 = arith.addf %48, %49 : vector<64x1xf32>
      %cst_35 = arith.constant dense<0.000000e+00> : vector<1xf32>
      %51 = vector.multi_reduction <add>, %50, %cst_35 [0] : vector<64x1xf32> to vector<1xf32>
      %52 = vector.shape_cast %51 : vector<1xf32> to vector<1x1xf32>
      %cst_36 = arith.constant 6.400000e+01 : f32
      %53 = vector.broadcast %cst_36 : f32 to vector<1x1xf32>
      %54 = arith.divf %52, %53 : vector<1x1xf32>
      %55 = vector.broadcast %54 : vector<1x1xf32> to vector<64x1xf32>
      %56 = arith.subf %50, %55 : vector<64x1xf32>
      %57 = arith.mulf %56, %56 : vector<64x1xf32>
      %cst_37 = arith.constant dense<0.000000e+00> : vector<1xf32>
      %58 = vector.multi_reduction <add>, %57, %cst_37 [0] : vector<64x1xf32> to vector<1xf32>
      %59 = vector.shape_cast %58 : vector<1xf32> to vector<1x1xf32>
      %cst_38 = arith.constant 6.400000e+01 : f32
      %60 = vector.broadcast %cst_38 : f32 to vector<1x1xf32>
      %61 = arith.divf %59, %60 : vector<1x1xf32>
      %62 = vector.broadcast %54 : vector<1x1xf32> to vector<64x1xf32>
      %63 = arith.subf %50, %62 : vector<64x1xf32>
      %cst_39 = arith.constant 9.99999974E-6 : f32
      %64 = vector.broadcast %cst_39 : f32 to vector<1x1xf32>
      %65 = arith.addf %61, %64 : vector<1x1xf32>
      %66 = math.rsqrt %65 : vector<1x1xf32>
      %67 = vector.broadcast %66 : vector<1x1xf32> to vector<64x1xf32>
      %68 = arith.mulf %63, %67 : vector<64x1xf32>
      %c0_40 = arith.constant 0 : index
      %c0_41 = arith.constant 0 : index
      %69 = vector.load %arg8[%c0_40, %c0_41] : memref<64x1xf32, #tpu.memory_space<vmem>>, vector<64x1xf32>
      %70 = arith.mulf %68, %69 : vector<64x1xf32>
      %c0_42 = arith.constant 0 : index
      %c0_43 = arith.constant 0 : index
      %71 = vector.load %arg9[%c0_42, %c0_43] : memref<64x1xf32, #tpu.memory_space<vmem>>, vector<64x1xf32>
      %72 = arith.addf %70, %71 : vector<64x1xf32>
      %73 = arith.negf %72 : vector<64x1xf32>
      %74 = math.exp %73 : vector<64x1xf32>
      %cst_44 = arith.constant 1.000000e+00 : f32
      %75 = vector.broadcast %cst_44 : f32 to vector<64x1xf32>
      %76 = arith.addf %75, %74 : vector<64x1xf32>
      %77 = arith.divf %75, %76 : vector<64x1xf32>
      %c0_45 = arith.constant 0 : index
      %c0_46 = arith.constant 0 : index
      %c0_47 = arith.constant 0 : index
      %78 = vector.load %arg10[%c0_45, %c0_46, %c0_47] : memref<1x64x1xf32, #tpu.memory_space<vmem>>, vector<1x64x1xf32>
      %79 = vector.shape_cast %78 : vector<1x64x1xf32> to vector<64x1xf32>
      %80 = vector.shape_cast %77 : vector<64x1xf32> to vector<1x64x1xf32>
      tpu.vector_store %arg10[%c0_45, %c0_46, %c0_47], %80 {strides = array<i32>} : memref<1x64x1xf32, #tpu.memory_space<vmem>>, vector<1x64x1xf32>,
    } else {
    }
    return
  }
  func.func @transform_0(%arg0: i32, %arg1: i32) -> (i32, i32, i32) {
    %c0_i32 = arith.constant 0 : i32
    %c0_i32_0 = arith.constant 0 : i32
    return %arg0, %c0_i32, %arg1 : i32, i32, i32
  }
  func.func @transform_1(%arg0: i32, %arg1: i32) -> (i32, i32) {
    %c0_i32 = arith.constant 0 : i32
    %c0_i32_0 = arith.constant 0 : i32
    %c0_i32_1 = arith.constant 0 : i32
    return %c0_i32, %c0_i32_0 : i32, i32
  }
  func.func @transform_2(%arg0: i32, %arg1: i32) -> (i32, i32) {
    %c0_i32 = arith.constant 0 : i32
    %c0_i32_0 = arith.constant 0 : i32
    %c0_i32_1 = arith.constant 0 : i32
    return %c0_i32, %c0_i32_0 : i32, i32
  }
  func.func @transform_3(%arg0: i32, %arg1: i32) -> (i32, i32) {
    %c0_i32 = arith.constant 0 : i32
    %c0_i32_0 = arith.constant 0 : i32
    %c0_i32_1 = arith.constant 0 : i32
    return %c0_i32, %c0_i32_0 : i32, i32
  }
  func.func @transform_4(%arg0: i32, %arg1: i32) -> (i32, i32) {
    %c0_i32 = arith.constant 0 : i32
    %c0_i32_0 = arith.constant 0 : i32
    %c0_i32_1 = arith.constant 0 : i32
    return %c0_i32, %c0_i32_0 : i32, i32
  }
  func.func @transform_5(%arg0: i32, %arg1: i32) -> (i32, i32) {
    %c0_i32 = arith.constant 0 : i32
    %c0_i32_0 = arith.constant 0 : i32
    %c0_i32_1 = arith.constant 0 : i32
    return %c0_i32, %c0_i32_0 : i32, i32
  }
  func.func @transform_6(%arg0: i32, %arg1: i32) -> (i32, i32) {
    %c0_i32 = arith.constant 0 : i32
    %c0_i32_0 = arith.constant 0 : i32
    %c0_i32_1 = arith.constant 0 : i32
    return %c0_i32, %c0_i32_0 : i32, i32
  }
  func.func @transform_7(%arg0: i32, %arg1: i32) -> (i32, i32) {
    %c0_i32 = arith.constant 0 : i32
    %c0_i32_0 = arith.constant 0 : i32
    %c0_i32_1 = arith.constant 0 : i32
    return %c0_i32, %c0_i32_0 : i32, i32
  }
  func.func @transform_8(%arg0: i32, %arg1: i32) -> (i32, i32, i32) {
    %c0_i32 = arith.constant 0 : i32
    %c0_i32_0 = arith.constant 0 : i32
    %c0_i32_1 = arith.constant 0 : i32
    return %arg0, %c0_i32, %c0_i32_0 : i32, i32, i32
  }
}

</mosaic_0001>

<bundles_post_ra>
// kernel: fbc_forward.3
= control target key start
LH: loop header
LB: loop body
LE: loop exit
PB: predicated region body
PF: predicated region fallthrough
CT: control target
= control target key end

     0   :  { %s839_s15 = smov 0   ;;  %s841_s16 = smov 0   ;;  %s962_s0 = inlined_call_operand.vmem [shape: f32[2,64,1], index: 0, kind: input, shape index: {}]   ;;  %s963_s1 = inlined_call_operand.vmem [shape: bf16[2,64,256], index: 1, kind: input, shape index: {}]   ;;  %s964_s2 = inlined_call_operand.vmem [shape: bf16[32,64], index: 2, kind: input, shape index: {}]   ;;  %s965_s3 = inlined_call_operand.vmem [shape: f32[32,1], index: 3, kind: input, shape index: {}]   ;;  %s966_s4 = inlined_call_operand.vmem [shape: f32[2,32,256], index: 4, kind: output, shape index: {}]  }
   0x1   :  { %s843_s17 = smov 0   ;;  %s845_s18 = smov 0  }
   0x2   :  { %s847_s19 = smov 0   ;;  %s849_s20 = smov 0  }
   0x3   :  { %s851_s21 = smov 0  }
   0x4 LB: > { %s23_s22 = sadd.s32 1, %s802_s19  ;;  %s26_s23 = sadd.s32 1, %s806_s20  ;;  %s810_s21 = sphi %s851_s21, %s14_s21   ;;  %s806_s20 = sphi %s849_s20, %s973_s20   ;;  %s802_s19 = sphi %s847_s19, %s972_s19   ;;  %s798_s18 = sphi %s845_s18, %s971_s18   ;;  %s794_s17 = sphi %s843_s17, %s970_s17   ;;  %s790_s16 = sphi %s841_s16, %s969_s16   ;;  %s786_s15 = sphi %s839_s15, %s968_s15  }
   0x5   : > { %p24_p0 = scmp.ge.s32.totalorder %s23_s22, 2  ;;  %s642_s24 = sadd.s32 4294967295, %s810_s21  }
   0x6   : > { %p68_p1 = scmp.ne.s32.totalorder %s790_s16, %s786_s15  ;;  %p69_p2 = scmp.eq.s32.totalorder %s810_s21, 0 }
   0x7   : > { %s975_s22 = smov (%p24_p0, %s23_s22), 0  ;;  %s977_s23 = smov (!%p24_p0, %s26_s23), %s806_s20 }
   0x8   : > { %p28_p3 = scmp.ge.s32.totalorder %s977_s23, 2  ;;  %p142_p4 = scmp.eq.s32.totalorder %s642_s24, 3 }
   0x9   : > { %s57_s25 = ssub.s32 %s802_s19, %s975_s22  ;;  %p70_p5 = por %p69_p2, %p68_p1 }
   0xa   : > { %s979_s23 = smov (%p28_p3, %s977_s23), 0  ;;  %p887_p6 = por %p142_p4, %p68_p1 }
   0xb   : > { %s56_s27 = ssub.s32 %s806_s20, %s979_s23  ;;  %s61_s29 = sadd.s32 1, %s790_s16 }
   0xc   : > { %s58_s28 = sor.u32 %s57_s25, %s56_s27  ;;  %p645_p8 = scmp.ge.s32.totalorder %s810_s21, 4 }
   0xd   : > { %p59_p7 = scmp.eq.s32.totalorder %s58_s28, 0 }
   0xe   : > { %170 = sbr.rel (%p645_p8) target bundleno = 33 (0x21), region = 24 }
   0xf   : > { %s895_s30 = scalar_select %p59_p7, %s790_s16, %s61_s29  }
  0x13   : > { %181 = sbr.rel (!%p70_p5) target bundleno = 33 (0x21), region = 32  ;;  %s183_s5 = sand.u32 (%p70_p5), 1, %s790_s16  }
  0x14   : > { %s647_s6 = sshll.u32 (%p70_p5), %s806_s20, 4  ;;  %s646_s7 = sshll.u32 (%p70_p5), %s183_s5, 5 }
  0x15   : > { %s187_s8 = sadd.s32 (%p70_p5), %s802_s19, %s647_s6  ;;  %s185_s13 = scalar_lea.vmem (%p70_p5), [#allocation2], %s646_s7 }
  0x16   : > { %s648_s9 = sshll.u32 (%p70_p5), %s187_s8, 2 }
  0x17   : > { %s189_s12 = scalar_lea.vmem (%p70_p5), %s963_s1, %s648_s9 }
  0x18   : > { %v206_v0 = vld [vmem:[%s189_s12] sm:$0xf]  ;;  %v208_v1 = vld [vmem:[%s189_s12 + $0x8] sm:$0xf]  ;;  %v210_v2 = vld [vmem:[%s189_s12 + $0x10] sm:$0xf] }
  0x19   : > { %207 = vst [vmem:[%s185_s13] sm:$0xf] %v206_v0  ;;  %v212_v3 = vld [vmem:[%s189_s12 + $0x18] sm:$0xf]  ;;  %v214_v4 = vld [vmem:[%s189_s12 + $0x20] sm:$0xf] }
  0x1a   : > { %209 = vst [vmem:[%s185_s13 + $0x4] sm:$0xf] %v208_v1  ;;  %v216_v5 = vld [vmem:[%s189_s12 + $0x28] sm:$0xf]  ;;  %v218_v6 = vld [vmem:[%s189_s12 + $0x30] sm:$0xf] }
  0x1b   : > { %211 = vst [vmem:[%s185_s13 + $0x8] sm:$0xf] %v210_v2  ;;  %v220_v7 = vld [vmem:[%s189_s12 + $0x38] sm:$0xf] }
  0x1c   : > { %213 = vst [vmem:[%s185_s13 + $0xc] sm:$0xf] %v212_v3 }
  0x1d   : > { %215 = vst [vmem:[%s185_s13 + $0x10] sm:$0xf] %v214_v4 }
  0x1e   : > { %217 = vst [vmem:[%s185_s13 + $0x14] sm:$0xf] %v216_v5 }
  0x1f   : > { %219 = vst [vmem:[%s185_s13 + $0x18] sm:$0xf] %v218_v6 }
  0x20   : > { %221 = vst [vmem:[%s185_s13 + $0x1c] sm:$0xf] %v220_v7 }
  0x21 PF: > { %p649_p9 = scmp.ge.s32.totalorder %s810_s21, 1  ;;  %p260_p10 = scmp.lt.s32.totalorder %s810_s21, 5 }
  0x23   : > { %p261_p11 = pnand %p649_p9, %p260_p10 }
  0x24   : > { %p296_p12 = scmp.lt.s32.totalorder (!%p261_p11), %s798_s18, 1  ;;  %s267_s12 = sand.u32 (!%p261_p11), 1, %s786_s15  }
  0x25   : > { %264 = sbr.rel (%p261_p11) target bundleno = 343 (0x157), region = 73  ;;  %s924_s13 = sshll.u32 (!%p261_p11), %s267_s12, 5 }
  0x2a   : > { %v812_v8 = vmov 0   ;;  %s297_s14 = scalar_select %p296_p12, %s798_s18, 1  ;;  %v438_v33 = vld [vmem:[%s965_s3] sm:$0xff]  ;;  %v440_v34 = vld [vmem:[%s965_s3 + $0x10] sm:$0xff]  ;;  %v439_v35 = vld [vmem:[%s965_s3 + $0x8] sm:$0xff]  ;;  %vm472_vm0 = vcmask 523264  }
  0x2b   : > { %754 = vset.pattern.permute.xlu1 %v812_v8  ;;  %753 = vset.pattern.permute.xlu0 %v812_v8  ;;  %v441_v36 = vld [vmem:[%s965_s3 + $0x18] sm:$0xff]  ;;  %v813_v37 = vmov 839922192   ;;  %s665_s29 = sshll.u32 (%p887_p6), %s798_s18, 3 }
  0x2c   : > { %755 = vset.pattern.permute.xlu2 %v812_v8  ;;  %s669_s24 = sshll.u32 %s297_s14, 6  ;;  %v340_v38 = vunpack.c.l.s4 %v813_v37  ;;  %s269_s14 = scalar_lea.vmem [#allocation2], %s924_s13 }
  0x2d   : > { %s300_s28 = scalar_lea.vmem %s962_s0, %s669_s24  ;;  %v690_v43 = vld [vmem:[%s269_s14 + $0x18] sm:$0xff]   ;;  %v689_v55 = vld [vmem:[%s269_s14 + $0x10] sm:$0xff]   ;;  %v688_v56 = vld [vmem:[%s269_s14 + $0x8] sm:$0xff]   ;;  %s510_s5 = sadd.s32 (%p887_p6), %s794_s17, %s665_s29 }
  0x2e   : > { %v316_v9 = vld [vmem:[%s300_s28 + $0x30] sm:$0xff]  ;;  %v314_v10 = vld [vmem:[%s300_s28 + $0x20] sm:$0xff]  ;;  %v317_v14 = vld [vmem:[%s300_s28 + $0x38] sm:$0xff]  ;;  %v341_v42 = vunpack.c.0.s8 %v340_v38  ;;  %v686_v45 = vunpack.c.l.bf16 %v690_v43  ;;  %v687_v47 = vunpack.c.h.bf16 %v690_v43  ;;  %v683_v59 = vunpack.c.h.bf16 %v689_v55  ;;  %s666_s6 = sshll.u32 (%p887_p6), %s510_s5, 3 }
  0x2f   : > { %v324_v11 = vadd.f32 1.0, %v316_v9  ;;  %v322_v12 = vadd.f32 1.0, %v314_v10  ;;  %v312_v13 = vld [vmem:[%s300_s28 + $0x10] sm:$0xff]  ;;  %v315_v15 = vld [vmem:[%s300_s28 + $0x28] sm:$0xff]  ;;  %v313_v19 = vld [vmem:[%s300_s28 + $0x18] sm:$0xff]  ;;  %v325_v21 = vadd.f32 1.0, %v317_v14  ;;  %v682_v62 = vunpack.c.l.bf16 %v689_v55  ;;  %s512_s9 = scalar_lea.vmem (%p887_p6), %s966_s4, %s666_s6 }
  0x30   : > { %v320_v16 = vadd.f32 1.0, %v312_v13  ;;  %v323_v22 = vadd.f32 1.0, %v315_v15  ;;  %v321_v23 = vadd.f32 1.0, %v313_v19  ;;  %v311_v27 = vld [vmem:[%s300_s28 + $0x8] sm:$0xff]  ;;  %v310_v28 = vld [vmem:[%s300_s28] sm:$0xff]  ;;  %v678_v1 = vunpack.c.l.bf16 %v688_v56  ;;  %s295_s28 = scalar_lea.vmem [#allocation3], %s924_s13 }
  0x31   : > { %v332_v17 = vpack.c.bf16 %v324_v11, %v324_v11  ;;  %v330_v18 = vpack.c.bf16 %v322_v12, %v322_v12  ;;  %v333_v24 = vpack.c.bf16 %v325_v21, %v325_v21  ;;  %v319_v29 = vadd.f32 1.0, %v311_v27  ;;  %v673_v6 = vld [vmem:[%s269_s14] sm:$0xff]  }
  0x32   : > { %v328_v20 = vpack.c.bf16 %v320_v16, %v320_v16  ;;  %v331_v25 = vpack.c.bf16 %v323_v22, %v323_v22  ;;  %v329_v26 = vpack.c.bf16 %v321_v23, %v321_v23  ;;  %v318_v30 = vadd.f32 1.0, %v310_v28 }
  0x33   : > { %390 = vperm.xlu0 %753, %v332_v17   ;;  %372 = vperm.xlu1 %754, %v330_v18   ;;  %v327_v31 = vpack.c.bf16 %v319_v29, %v319_v29  ;;  %v679_v3 = vunpack.c.h.bf16 %v688_v56  ;;  %v675_v14 = vunpack.c.h.bf16 %v673_v6  ;;  %v674_v15 = vunpack.c.l.bf16 %v673_v6 }
  0x34   : > { %354 = vperm.xlu2 %755, %v328_v20   ;;  %v326_v32 = vpack.c.bf16 %v318_v30, %v318_v30 }
  0x3b   : > { %399 = vperm.xlu0 %753, %v333_v24   ;;  %381 = vperm.xlu1 %754, %v331_v25   ;;  %v670_v24 = vld [vmem:[%s964_s2] sm:$0xff]  ;;  %v671_v25 = vld [vmem:[%s964_s2 + $0x8] sm:$0xff] }
  0x3c   : > { %363 = vperm.xlu2 %755, %v329_v26  }
  0x43   : > { %345 = vperm.xlu1 %754, %v327_v31   ;;  %336 = vperm.xlu0 %753, %v326_v32  }
  0x44   : > { %444 = vperm.xlu2 %755, %v438_v33  }
  0x4b   : > { %454 = vperm.xlu1 %754, %v440_v34   ;;  %449 = vperm.xlu0 %753, %v439_v35  }
  0x4c   : > { %459 = vperm.xlu2 %755, %v441_v36  }
  0x8e   : > { %v355_v39 = vpop.permute.xlu2 %354 }
  0x8f   : > { %v360_v53 = vperm.slane %v355_v39, %v341_v42 }
  0x91   : > { %v416_v2 = vunpack.c.l.bf16 %v360_v53 }
  0x93   : > { %v424_v13 = vmul.f32 %v678_v1, %v416_v2 }
  0x96   : > { %v364_v54 = vpop.permute.xlu2 %363 }
  0x97   : > { %v369_v57 = vperm.slane %v364_v54, %v341_v42 }
  0x99   : > { %v417_v4 = vunpack.c.l.bf16 %v369_v57 }
  0x9b   : > { %v425_v16 = vmul.f32 %v679_v3, %v417_v4 }
  0x9d   : > { %v431_v22 = vpack.c.bf16 %v425_v16, %v424_v13 }
  0x9e   : > { %v445_v26 = vpop.permute.xlu2 %444 }
  0xa5   : > { %v391_v40 = vpop.permute.xlu0 %390  ;;  %v373_v41 = vpop.permute.xlu1 %372 }
  0xa6   : > { %v396_v44 = vperm.slane %v391_v40, %v341_v42  ;;  %v378_v50 = vperm.slane %v373_v41, %v341_v42  ;;  %v460_v32 = vpop.permute.xlu2 %459 }
  0xa8   : > { %v420_v49 = vunpack.c.l.bf16 %v396_v44  ;;  %v418_v63 = vunpack.c.l.bf16 %v378_v50 }
  0xaa   : > { %v428_v61 = vmul.f32 %v686_v45, %v420_v49  ;;  %v426_v10 = vmul.f32 %v682_v62, %v418_v63 }
  0xad   : > { %v400_v46 = vpop.permute.xlu0 %399  ;;  %v382_v48 = vpop.permute.xlu1 %381 }
  0xae   : > { %v405_v51 = vperm.slane %v400_v46, %v341_v42  ;;  %v387_v52 = vperm.slane %v382_v48, %v341_v42 }
  0xb0   : > { %v421_v58 = vunpack.c.l.bf16 %v405_v51  ;;  %v419_v60 = vunpack.c.l.bf16 %v387_v52 }
  0xb2   : > { %v429_v0 = vmul.f32 %v687_v47, %v421_v58  ;;  %v427_v5 = vmul.f32 %v683_v59, %v419_v60 }
  0xb4   : > { %v433_v7 = vpack.c.bf16 %v429_v0, %v428_v61  ;;  %v432_v19 = vpack.c.bf16 %v427_v5, %v426_v10 }
  0xb5   : > { %v346_v8 = vpop.permute.xlu1 %345  ;;  %v337_v9 = vpop.permute.xlu0 %336 }
  0xb6   : > { %v351_v11 = vperm.slane %v346_v8, %v341_v42  ;;  %v342_v12 = vperm.slane %v337_v9, %v341_v42  ;;  %483 = vmatpush.bf16.msra.mxu0 %v433_v7  ;;  %691 = vmatpush.bf16.msra.mxu1 %v433_v7 }
  0xb8   : > { %v415_v17 = vunpack.c.l.bf16 %v351_v11  ;;  %v414_v18 = vunpack.c.l.bf16 %v342_v12 }
  0xba   : > { %484 = vmatpush.bf16.msra.mxu0 %v432_v19  ;;  %692 = vmatpush.bf16.msra.mxu1 %v432_v19  ;;  %v423_v20 = vmul.f32 %v675_v14, %v415_v17  ;;  %v422_v21 = vmul.f32 %v674_v15, %v414_v18 }
  0xbc   : > { %v430_v23 = vpack.c.bf16 %v423_v20, %v422_v21 }
  0xbd   : > { %v455_v27 = vpop.permute.xlu1 %454  ;;  %v450_v33 = vpop.permute.xlu0 %449 }
  0xbe   : > { %485 = vmatpush.bf16.msra.mxu0 %v431_v22  ;;  %693 = vmatpush.bf16.msra.mxu1 %v431_v22 }
  0xc2   : > { %486 = vmatpush.bf16.msra.mxu0 %v430_v23  ;;  %694 = vmatpush.bf16.msra.mxu1 %v430_v23 }
  0xc5   : > { %662 = vmatmul.msk.bf16.vlgmr.msra.gmra.mxu0 %vm472_vm0, %v670_v24  ;;  %663 = vmatmul.msk.bf16.vlgmr.msra.gmra.mxu1 %vm472_vm0, %v671_v25 }
 0x142   : > { %v488_v28 = vpop.f32.mrf.mxu0  ;;  %v493_v29 = vpop.f32.mrf.mxu1 }
 0x143   : > { %v489_v30 = vadd.f32 %v488_v28, %v445_v26  ;;  %v494_v31 = vadd.f32 %v493_v29, %v455_v27 }
 0x145   : > { %498 = vst [vmem:[%s295_s28] sm:$0xff] %v489_v30 }
 0x146   : > { %500 = vst [vmem:[%s295_s28 + $0x10] sm:$0xff] %v494_v31 }
 0x14a   : > { %v490_v34 = vpop.f32.mrf.mxu0  ;;  %v495_v35 = vpop.f32.mrf.mxu1  ;;  %508 = sbr.rel (!%p887_p6) target bundleno = 343 (0x157), region = 81 }
 0x14b   : > { %v491_v36 = vadd.f32 %v490_v34, %v450_v33  ;;  %v496_v37 = vadd.f32 %v495_v35, %v460_v32 }
 0x14c   : > { %v547_v38 = vld [vmem:[%s295_s28] sm:$0xff] (%p887_p6) }
 0x14d   : > { %499 = vst [vmem:[%s295_s28 + $0x8] sm:$0xff] %v491_v36  ;;  %v551_v40 = vld [vmem:[%s295_s28 + $0x10] sm:$0xff] (%p887_p6) }
 0x14e   : > { %501 = vst [vmem:[%s295_s28 + $0x18] sm:$0xff] %v496_v37 }
 0x14f   : > { %548 = vst [vmem:[%s512_s9] sm:$0xff] %v547_v38 }
 0x150   : > { %552 = vst [vmem:[%s512_s9 + $0x20] sm:$0xff] %v551_v40 }
 0x154   : > { %v549_v39 = vld [vmem:[%s295_s28 + $0x8] sm:$0xff] }
 0x155   : > { %v553_v41 = vld [vmem:[%s295_s28 + $0x18] sm:$0xff]  ;;  %550 = vst [vmem:[%s512_s9 + $0x10] sm:$0xff] %v549_v39 }
 0x156   : > { %554 = vst [vmem:[%s512_s9 + $0x30] sm:$0xff] %v553_v41 }
 0x157 PF: > { %s14_s21 = sadd.s32 1, %s810_s21   ;;  %s968_s15 = smov %s790_s16 }
 0x158   : > { %p11_p13 = scmp.ge.s32.totalorder %s14_s21, 6   ;;  %s969_s16 = smov %s895_s30 }
 0x159   : > { %s970_s17 = smov %s802_s19  ;;  %s971_s18 = smov %s806_s20 }
 0x15a   : > { %s972_s19 = smov %s975_s22  ;;  %s973_s20 = smov %s979_s23 }
 0x15b   :  { %13 = sbr.rel (!%p11_p13) target bundleno = 4 (0x4), region = 153 }

// kernel: fbc_forward.2
= control target key start
LH: loop header
LB: loop body
LE: loop exit
PB: predicated region body
PF: predicated region fallthrough
CT: control target
= control target key end

     0   :  { %s1355_s27 = smov 0   ;;  %s1357_s28 = smov 0   ;;  %s1702_s0 = inlined_call_operand.vmem [shape: bf16[2,64,256], index: 0, kind: input, shape index: {}]   ;;  %s1703_s1 = inlined_call_operand.vmem [shape: bf16[1,64], index: 1, kind: input, shape index: {}]   ;;  %s1704_s2 = inlined_call_operand.vmem [shape: bf16[32,64], index: 2, kind: input, shape index: {}]   ;;  %s1705_s3 = inlined_call_operand.vmem [shape: f32[32,1], index: 3, kind: input, shape index: {}]   ;;  %s1706_s4 = inlined_call_operand.vmem [shape: bf16[64,32], index: 4, kind: input, shape index: {}]   ;;  %s1707_s5 = inlined_call_operand.vmem [shape: f32[64,1], index: 5, kind: input, shape index: {}]   ;;  %s1708_s6 = inlined_call_operand.vmem [shape: f32[64,1], index: 6, kind: input, shape index: {}]   ;;  %s1709_s7 = inlined_call_operand.vmem [shape: f32[64,1], index: 7, kind: input, shape index: {}]   ;;  %s1710_s8 = inlined_call_operand.vmem [shape: f32[2,64,1], index: 8, kind: output, shape index: {}]  }
   0x1   :  { %s1359_s29 = smov 0   ;;  %s1361_s30 = smov 0  }
   0x2   :  { %s1363_s9 = smov 0   ;;  %s1365_s10 = smov 0  }
   0x3   :  { %s1367_s11 = smov 0  }
   0x4 LB: > { %s27_s12 = sadd.s32 1, %s1296_s9  ;;  %s30_s13 = sadd.s32 1, %s1300_s10  ;;  %s1304_s11 = sphi %s1367_s11, %s18_s11   ;;  %s1300_s10 = sphi %s1365_s10, %s1726_s10   ;;  %s1296_s9 = sphi %s1363_s9, %s1725_s9   ;;  %s1292_s30 = sphi %s1361_s30, %s1724_s30   ;;  %s1288_s29 = sphi %s1359_s29, %s1723_s29   ;;  %s1284_s28 = sphi %s1357_s28, %s1722_s28   ;;  %s1280_s27 = sphi %s1355_s27, %s1721_s27  }
   0x5   : > { %p28_p0 = scmp.ge.s32.totalorder %s27_s12, 2  ;;  %p46_p1 = scmp.ne.s32.totalorder %s1284_s28, %s1280_s27 }
   0x6   : > { %p47_p2 = scmp.eq.s32.totalorder %s1304_s11, 0  ;;  %s39_s17 = sadd.s32 1, %s1284_s28 }
   0x7   : > { %s1728_s12 = smov (%p28_p0, %s27_s12), 0  ;;  %s1730_s13 = smov (!%p28_p0, %s30_s13), %s1300_s10 }
   0x8   : > { %p48_p3 = por %p47_p2, %p46_p1  ;;  %p32_p4 = scmp.ge.s32.totalorder %s1730_s13, 2 }
   0x9   : > { %s35_s14 = ssub.s32 %s1296_s9, %s1728_s12  ;;  %p1063_p6 = scmp.ge.s32.totalorder %s1304_s11, 4 }
   0xa   : > { %s1732_s13 = smov (%p32_p4, %s1730_s13), 0 }
   0xb   : > { %s34_s15 = ssub.s32 %s1300_s10, %s1732_s13  ;;  %266 = sbr.rel (%p1063_p6) target bundleno = 30 (0x1e), region = 44 }
   0xc   : > { %s36_s16 = sor.u32 %s35_s14, %s34_s15 }
   0xd   : > { %p37_p5 = scmp.eq.s32.totalorder %s36_s16, 0 }
   0xf   : > { %s1406_s18 = scalar_select %p37_p5, %s1284_s28, %s39_s17  }
  0x10   : > { %269 = sbr.rel (!%p48_p3) target bundleno = 30 (0x1e), region = 48  ;;  %s271_s19 = sand.u32 (%p48_p3), 1, %s1284_s28  }
  0x11   : > { %s1065_s20 = sshll.u32 (%p48_p3), %s1300_s10, 4  ;;  %s1064_s21 = sshll.u32 (%p48_p3), %s271_s19, 5 }
  0x12   : > { %s275_s22 = sadd.s32 (%p48_p3), %s1296_s9, %s1065_s20  ;;  %s273_s14 = scalar_lea.vmem (%p48_p3), [#allocation5], %s1064_s21 }
  0x13   : > { %s1066_s23 = sshll.u32 (%p48_p3), %s275_s22, 2 }
  0x14   : > { %s277_s26 = scalar_lea.vmem (%p48_p3), %s1702_s0, %s1066_s23 }
  0x15   : > { %v294_v0 = vld [vmem:[%s277_s26] sm:$0xf]  ;;  %v296_v1 = vld [vmem:[%s277_s26 + $0x8] sm:$0xf]  ;;  %v298_v2 = vld [vmem:[%s277_s26 + $0x10] sm:$0xf] }
  0x16   : > { %295 = vst [vmem:[%s273_s14] sm:$0xf] %v294_v0  ;;  %v300_v3 = vld [vmem:[%s277_s26 + $0x18] sm:$0xf]  ;;  %v302_v4 = vld [vmem:[%s277_s26 + $0x20] sm:$0xf] }
  0x17   : > { %297 = vst [vmem:[%s273_s14 + $0x4] sm:$0xf] %v296_v1  ;;  %v304_v5 = vld [vmem:[%s277_s26 + $0x28] sm:$0xf]  ;;  %v306_v6 = vld [vmem:[%s277_s26 + $0x30] sm:$0xf] }
  0x18   : > { %299 = vst [vmem:[%s273_s14 + $0x8] sm:$0xf] %v298_v2  ;;  %v308_v7 = vld [vmem:[%s277_s26 + $0x38] sm:$0xf] }
  0x19   : > { %301 = vst [vmem:[%s273_s14 + $0xc] sm:$0xf] %v300_v3 }
  0x1a   : > { %303 = vst [vmem:[%s273_s14 + $0x10] sm:$0xf] %v302_v4 }
  0x1b   : > { %305 = vst [vmem:[%s273_s14 + $0x14] sm:$0xf] %v304_v5 }
  0x1c   : > { %307 = vst [vmem:[%s273_s14 + $0x18] sm:$0xf] %v306_v6 }
  0x1d   : > { %309 = vst [vmem:[%s273_s14 + $0x1c] sm:$0xf] %v308_v7 }
  0x1e PF: > { %p1067_p7 = scmp.ge.s32.totalorder %s1304_s11, 1  ;;  %p348_p8 = scmp.lt.s32.totalorder %s1304_s11, 5 }
  0x20   : > { %p349_p9 = pnand %p1067_p7, %p348_p8 }
  0x21   : > { %s355_s15 = sand.u32 (!%p349_p9), 1, %s1280_s27   ;;  %p388_p10 = scmp.lt.s32.totalorder (!%p349_p9), %s1292_s30, 1 }
  0x22   : > { %352 = sbr.rel (%p349_p9) target bundleno = 1059 (0x423), region = 89  ;;  %s1068_s16 = sshll.u32 (!%p349_p9), %s355_s15, 5 }
  0x23   : > { %s1425_s22 = scalar_lea.vmem (!%p349_p9), [#allocation5], %s1068_s16  ;;  %p1071_p11 = scmp.ne.s32.totalorder (!%p349_p9), %s1288_s29, 0 }
  0x27   : > { %s1734_s30 = smov (!%p388_p10, %s1292_s30), 1  ;;  %397 = sbr.rel (%p1071_p11) target bundleno = 55 (0x37), region = 97 }
  0x28   : > { %s1130_s17 = sshll.u32 %s1734_s30, 6 }
  0x29   : > { %s1423_s21 = scalar_lea.vmem %s1710_s8, %s1130_s17 }
  0x2c   : > { %vm398_vm0 = vcmask 0   ;;  %vm401_vm1 = vcmask 7168   ;;  %v1306_v8 = vmov -inf   ;;  %v1307_v9 = vmov 0.0  }
  0x2d   : > { %399 = vst.msk [vmem:[#allocation2] sm:$0x1] %vm398_vm0, %v1306_v8 }
  0x2e   : > { %400 = vst.msk [vmem:[#allocation3] sm:$0x1] %vm398_vm0, %v1307_v9 }
  0x2f   : > { %402 = vst.msk [vmem:[#allocation4] sm:$0xff] %vm401_vm1, %v1307_v9 }
  0x30   : > { %403 = vst.msk [vmem:[#allocation4 + $0x8] sm:$0xff] %vm401_vm1, %v1307_v9 }
  0x31   : > { %404 = vst.msk [vmem:[#allocation4 + $0x10] sm:$0xff] %vm401_vm1, %v1307_v9 }
  0x32   : > { %405 = vst.msk [vmem:[#allocation4 + $0x18] sm:$0xff] %vm401_vm1, %v1307_v9 }
  0x33   : > { %406 = vst.msk [vmem:[#allocation4 + $0x20] sm:$0xff] %vm401_vm1, %v1307_v9 }
  0x34   : > { %407 = vst.msk [vmem:[#allocation4 + $0x28] sm:$0xff] %vm401_vm1, %v1307_v9 }
  0x35   : > { %408 = vst.msk [vmem:[#allocation4 + $0x30] sm:$0xff] %vm401_vm1, %v1307_v9 }
  0x36   : > { %409 = vst.msk [vmem:[#allocation4 + $0x38] sm:$0xff] %vm401_vm1, %v1307_v9 }
  0x37 PF: > { %v1134_v10 = vld [vmem:[%s1425_s22 + $0x18] sm:$0xff]  ;;  %v1133_v11 = vld [vmem:[%s1425_s22 + $0x10] sm:$0xff]  ;;  %v1132_v12 = vld [vmem:[%s1425_s22 + $0x8] sm:$0xff]  ;;  %vm443_vm2 = vcmask 523264   ;;  %vm461_vm3 = vcmask 1040384   ;;  %v1308_v18 = vmov 0  }
  0x38   : > { %451 = vmatpush.bf16.msra.mxu0 %v1134_v10  ;;  %v1131_v13 = vld [vmem:[%s1425_s22] sm:$0xff]  ;;  %v418_v14 = vld [vmem:[%s1703_s1] sm:$0x1]  ;;  %1207 = vset.pattern.permute.xlu0 %v1308_v18  ;;  %vm484_vm4 = vcmask 0   ;;  %v413_v37 = vld [vmem:[%s1425_s22 + $0xc] sm:$0xff]   ;;  %vm546_vm5 = vcmask 7168  }
  0x39   : > { %v460_v19 = vld [vmem:[#allocation2] sm:$0x1]  ;;  %v411_v27 = vld [vmem:[%s1425_s22 + $0x4] sm:$0xff]   ;;  %v410_v32 = vld [vmem:[%s1425_s22] sm:$0xf]  ;;  %v508_v39 = vunpack.c.l.bf16 %v413_v37  ;;  %v509_v40 = vunpack.c.h.bf16 %v413_v37  ;;  %p1089_p12 = scmp.ne.s32.totalorder %s1288_s29, 1 }
  0x3a   : > { %v506_v28 = vunpack.c.l.bf16 %v411_v27  ;;  %v505_v34 = vunpack.c.l.bf16 %v410_v32  ;;  %v507_v35 = vunpack.c.h.bf16 %v411_v27  ;;  %v415_v42 = vld [vmem:[%s1425_s22 + $0x14] sm:$0xff]   ;;  %v417_v47 = vld [vmem:[%s1425_s22 + $0x1c] sm:$0xf]  ;;  %v487_v56 = vld [vmem:[#allocation4 + $0x8] sm:$0xff] }
  0x3b   : > { %v510_v44 = vunpack.c.l.bf16 %v415_v42  ;;  %v511_v45 = vunpack.c.h.bf16 %v415_v42  ;;  %v512_v49 = vunpack.c.l.bf16 %v417_v47  ;;  %v478_v53 = vld [vmem:[#allocation3] sm:$0x1]  ;;  %v486_v62 = vld [vmem:[#allocation4] sm:$0xff]  ;;  %v488_v0 = vld [vmem:[#allocation4 + $0x10] sm:$0xff] }
  0x3c   : > { %452 = vmatpush.bf16.msra.mxu0 %v1133_v11  ;;  %v489_v6 = vld [vmem:[#allocation4 + $0x18] sm:$0xff]  ;;  %v490_v8 = vld [vmem:[#allocation4 + $0x20] sm:$0xff] }
  0x40   : > { %453 = vmatpush.bf16.msra.mxu0 %v1132_v12 }
  0x44   : > { %454 = vmatpush.bf16.msra.mxu0 %v1131_v13 }
  0x47   : > { %1088 = vmatmul.msk.bf16.vlgmr.msra.gmra.mxu0 %vm443_vm2, %v418_v14  ;;  %v491_v14 = vld [vmem:[#allocation4 + $0x28] sm:$0xff] }
  0xc4   : > { %v456_v15 = vpop.f32.mrf.mxu0 }
  0xc5   : > { %v462_v16 = vsel %vm461_vm3, %v456_v15, -inf }
  0xc6   : > { %463 = vmax.xlane.f32.xlu0 %v462_v16  ;;  %v492_v16 = vld [vmem:[#allocation4 + $0x30] sm:$0xff] }
  0xcc   : > { %v458_v17 = vpop.f32.mrf.mxu0 }
 0x139   : > { %v464_v20 = vpop.xlane.xlu0 %463 }
 0x13a   : > { %v465_v21 = vmax.f32 %v460_v19, %v464_v20 }
 0x13c   : > { %v466_v22 = vsub.f32 %v460_v19, %v465_v21  ;;  %555 = vst.msk [vmem:[#allocation2] sm:$0x1] %vm484_vm4, %v465_v21  ;;  %471 = vperm.xlu0 %1207, %v465_v21  }
 0x13e   : > { %v467_v51 = vmul.f32 1.442695, %v466_v22  ;;  %v493_v22 = vld [vmem:[#allocation4 + $0x38] sm:$0xff] }
 0x1ae   : > { %v472_v23 = vpop.permute.xlu0 %471 }
 0x1af   : > { %v474_v24 = vperm.slane %v472_v23, 0 }
 0x1b1   : > { %v475_v25 = vsub.f32 %v456_v15, %v474_v24 }
 0x1b3   : > { %v476_v26 = vmul.f32 1.442695, %v475_v25 }
 0x1b5   : > { %1208 = vpow2.f32 %v476_v26 }
 0x1b6   : > { %1210 = vpow2.f32 %v467_v51 }
 0x1bb   : > { %v1209_v29 = vpop.eup %1208 }
 0x1bc   : > { %v513_v30 = vperm.slane %v1209_v29, 0  ;;  %v480_v31 = vsel %vm461_vm3, %v1209_v29, 0.0  ;;  %v1211_v52 = vpop.eup %1210 }
 0x1bd   : > { %481 = vadd.xlane.f32.xlu1 %v480_v31  ;;  %v495_v54 = vperm.slane %v1211_v52, 0  ;;  %v479_v55 = vmul.f32 %v1211_v52, %v478_v53 }
 0x1be   : > { %v515_v33 = vmul.f32 %v513_v30, %v506_v28  ;;  %v514_v36 = vmul.f32 %v513_v30, %v505_v34  ;;  %v516_v38 = vmul.f32 %v513_v30, %v507_v35  ;;  %v517_v41 = vmul.f32 %v513_v30, %v508_v39 }
 0x1bf   : > { %v518_v43 = vmul.f32 %v513_v30, %v509_v40  ;;  %v519_v46 = vmul.f32 %v513_v30, %v510_v44  ;;  %v520_v48 = vmul.f32 %v513_v30, %v511_v45  ;;  %v521_v50 = vmul.f32 %v513_v30, %v512_v49 }
 0x1c0   : > { %524 = vadd.xlane.f32.xlu2 %v515_v33  ;;  %v498_v59 = vmul.f32 %v495_v54, %v487_v56  ;;  %v497_v63 = vmul.f32 %v495_v54, %v486_v62  ;;  %v499_v3 = vmul.f32 %v495_v54, %v488_v0  ;;  %v500_v7 = vmul.f32 %v495_v54, %v489_v6 }
 0x1c1   : > { %v501_v11 = vmul.f32 %v495_v54, %v490_v8  ;;  %v502_v15 = vmul.f32 %v495_v54, %v491_v14  ;;  %v503_v19 = vmul.f32 %v495_v54, %v492_v16  ;;  %v504_v23 = vmul.f32 %v495_v54, %v493_v22 }
 0x1c5   : > { %522 = vadd.xlane.f32.xlu1 %v514_v36 }
 0x1c8   : > { %526 = vadd.xlane.f32.xlu2 %v516_v38 }
 0x1cd   : > { %528 = vadd.xlane.f32.xlu1 %v517_v41 }
 0x1d0   : > { %530 = vadd.xlane.f32.xlu2 %v518_v43 }
 0x1d5   : > { %532 = vadd.xlane.f32.xlu1 %v519_v46 }
 0x1d8   : > { %534 = vadd.xlane.f32.xlu2 %v520_v48 }
 0x1dd   : > { %536 = vadd.xlane.f32.xlu1 %v521_v50 }
 0x230   : > { %v482_v57 = vpop.xlane.xlu1 %481 }
 0x231   : > { %v483_v58 = vadd.f32 %v482_v57, %v479_v55 }
 0x233   : > { %485 = vst.msk [vmem:[#allocation3] sm:$0x1] %vm484_vm4, %v483_v58  ;;  %v525_v60 = vpop.xlane.xlu2 %524 }
 0x234   : > { %v539_v61 = vadd.f32 %v525_v60, %v498_v59 }
 0x236   : > { %548 = vst.msk [vmem:[#allocation4 + $0x8] sm:$0xff] %vm546_vm5, %v539_v61 }
 0x238   : > { %v523_v1 = vpop.xlane.xlu1 %522 }
 0x239   : > { %v538_v2 = vadd.f32 %v523_v1, %v497_v63 }
 0x23b   : > { %547 = vst.msk [vmem:[#allocation4] sm:$0xff] %vm546_vm5, %v538_v2  ;;  %v527_v4 = vpop.xlane.xlu2 %526 }
 0x23c   : > { %v540_v5 = vadd.f32 %v527_v4, %v499_v3 }
 0x23e   : > { %549 = vst.msk [vmem:[#allocation4 + $0x10] sm:$0xff] %vm546_vm5, %v540_v5 }
 0x240   : > { %v529_v9 = vpop.xlane.xlu1 %528 }
 0x241   : > { %v541_v10 = vadd.f32 %v529_v9, %v500_v7 }
 0x243   : > { %550 = vst.msk [vmem:[#allocation4 + $0x18] sm:$0xff] %vm546_vm5, %v541_v10  ;;  %v531_v12 = vpop.xlane.xlu2 %530 }
 0x244   : > { %v542_v13 = vadd.f32 %v531_v12, %v501_v11 }
 0x246   : > { %551 = vst.msk [vmem:[#allocation4 + $0x20] sm:$0xff] %vm546_vm5, %v542_v13 }
 0x248   : > { %v533_v17 = vpop.xlane.xlu1 %532 }
 0x249   : > { %v543_v18 = vadd.f32 %v533_v17, %v502_v15 }
 0x24b   : > { %552 = vst.msk [vmem:[#allocation4 + $0x28] sm:$0xff] %vm546_vm5, %v543_v18  ;;  %v535_v20 = vpop.xlane.xlu2 %534 }
 0x24c   : > { %v544_v21 = vadd.f32 %v535_v20, %v503_v19 }
 0x24e   : > { %553 = vst.msk [vmem:[#allocation4 + $0x30] sm:$0xff] %vm546_vm5, %v544_v21 }
 0x24f   : > { %559 = sbr.rel (%p1089_p12) target bundleno = 1059 (0x423), region = 101 }
 0x250   : > { %v537_v24 = vpop.xlane.xlu1 %536 }
 0x251   : > { %v545_v25 = vadd.f32 %v537_v24, %v504_v23 }
 0x253   : > { %554 = vst.msk [vmem:[#allocation4 + $0x38] sm:$0xff] %vm546_vm5, %v545_v25 }
 0x254   : > { %v568_v26 = vld [vmem:[#allocation3] sm:$0x1]  ;;  %v564_v30 = vld [vmem:[#allocation4 + $0x20] sm:$0xff]  ;;  %v565_v31 = vld [vmem:[#allocation4 + $0x28] sm:$0xff]  ;;  %vm666_vm6 = vcmask 261120   ;;  %v1309_v20 = vmov 64.0  }
 0x255   : > { %1212 = vrcp.f32 %v568_v26  ;;  %v566_v27 = vld [vmem:[#allocation4 + $0x30] sm:$0xff]  ;;  %v563_v38 = vld [vmem:[#allocation4 + $0x18] sm:$0xff]  ;;  %v560_v43 = vld [vmem:[#allocation4] sm:$0xff] }
 0x256   : > { %v562_v37 = vld [vmem:[#allocation4 + $0x10] sm:$0xff]  ;;  %v561_v44 = vld [vmem:[#allocation4 + $0x8] sm:$0xff]  ;;  %v1135_v50 = vld [vmem:[%s1704_s2] sm:$0xff]  ;;  %1214 = vrcp.f32 %v1309_v20 }
 0x257   : > { %v1136_v49 = vld [vmem:[%s1704_s2 + $0x8] sm:$0xff]  ;;  %v591_v53 = vld [vmem:[%s1705_s3 + $0x10] sm:$0xff]  ;;  %v592_v54 = vld [vmem:[%s1705_s3 + $0x18] sm:$0xff] }
 0x258   : > { %v589_v55 = vld [vmem:[%s1705_s3] sm:$0xff]  ;;  %v590_v56 = vld [vmem:[%s1705_s3 + $0x8] sm:$0xff]  ;;  %v1139_v2 = vld [vmem:[%s1706_s4 + $0x10] sm:$0xff] }
 0x259   : > { %v1137_v1 = vld [vmem:[%s1706_s4] sm:$0xff]  ;;  %v1138_v3 = vld [vmem:[%s1706_s4 + $0x8] sm:$0xff]  ;;  %v1140_v4 = vld [vmem:[%s1706_s4 + $0x18] sm:$0xff] }
 0x25a   : > { %v567_v29 = vld [vmem:[#allocation4 + $0x38] sm:$0xff]  ;;  %v639_v8 = vld [vmem:[%s1707_s5 + $0x8] sm:$0xff]  ;;  %v640_v11 = vld [vmem:[%s1707_s5 + $0x10] sm:$0xff] }
 0x25b   : > { %v1213_v28 = vpop.eup %1212  ;;  %v638_v10 = vld [vmem:[%s1707_s5] sm:$0xff]  ;;  %v641_v19 = vld [vmem:[%s1707_s5 + $0x18] sm:$0xff]  ;;  %v643_v24 = vld [vmem:[%s1707_s5 + $0x28] sm:$0xff] }
 0x25c   : > { %v571_v32 = vperm.slane %v1213_v28, 0  ;;  %v642_v17 = vld [vmem:[%s1707_s5 + $0x20] sm:$0xff] }
 0x25e   : > { %v579_v33 = vmul.f32 %v571_v32, %v566_v27  ;;  %v580_v34 = vmul.f32 %v571_v32, %v567_v29  ;;  %v577_v35 = vmul.f32 %v571_v32, %v564_v30  ;;  %v578_v36 = vmul.f32 %v571_v32, %v565_v31  ;;  %v644_v29 = vld [vmem:[%s1707_s5 + $0x30] sm:$0xff] }
 0x25f   : > { %v575_v41 = vmul.f32 %v571_v32, %v562_v37  ;;  %v576_v42 = vmul.f32 %v571_v32, %v563_v38  ;;  %v573_v46 = vmul.f32 %v571_v32, %v560_v43  ;;  %v574_v47 = vmul.f32 %v571_v32, %v561_v44  ;;  %v1215_v32 = vpop.eup %1214 }
 0x260   : > { %v588_v39 = vpack.c.bf16 %v580_v34, %v579_v33  ;;  %v587_v40 = vpack.c.bf16 %v578_v36, %v577_v35  ;;  %v645_v34 = vld [vmem:[%s1707_s5 + $0x38] sm:$0xff]  ;;  %vm734_vm7 = vweird.f32 %v1215_v32 }
 0x261   : > { %v586_v45 = vpack.c.bf16 %v576_v42, %v575_v41  ;;  %v585_v48 = vpack.c.bf16 %v574_v47, %v573_v46  ;;  %v730_v41 = vmul.f32 64.0, %v1215_v32 }
 0x262   : > { %1141 = vmatpush.bf16.msra.mxu3 %v588_v39  ;;  %613 = vmatpush.bf16.msra.mxu0 %v588_v39 }
 0x263   : > { %v731_v46 = vsub.f32 1.0, %v730_v41  ;;  %v796_v41 = vld [vmem:[%s1708_s6 + $0x10] sm:$0xff] }
 0x266   : > { %1142 = vmatpush.bf16.msra.mxu3 %v587_v40  ;;  %614 = vmatpush.bf16.msra.mxu0 %v587_v40 }
 0x26a   : > { %1143 = vmatpush.bf16.msra.mxu3 %v586_v45  ;;  %615 = vmatpush.bf16.msra.mxu0 %v586_v45 }
 0x26e   : > { %1144 = vmatpush.bf16.msra.mxu3 %v585_v48  ;;  %616 = vmatpush.bf16.msra.mxu0 %v585_v48 }
 0x271   : > { %1099 = vmatmul.msk.bf16.vlgmr.msra.gmra.mxu3 %vm443_vm2, %v1136_v49  ;;  %1098 = vmatmul.msk.bf16.vlgmr.msra.gmra.mxu0 %vm443_vm2, %v1135_v50  ;;  %v732_v49 = vmul.f32 %v1215_v32, %v731_v46 }
 0x2ee   : > { %v618_v51 = vpop.f32.mrf.mxu0 }
 0x2ef   : > { %v619_v61 = vadd.f32 %v618_v51, %v589_v55 }
 0x2f4   : > { %v623_v52 = vpop.f32.mrf.mxu3 }
 0x2f5   : > { %v624_v59 = vadd.f32 %v623_v52, %v591_v53  ;;  %v733_v52 = vadd.f32 %v1215_v32, %v732_v49 }
 0x2f6   : > { %v620_v57 = vpop.f32.mrf.mxu0 }
 0x2f7   : > { %v621_v62 = vadd.f32 %v620_v57, %v590_v56  ;;  %v735_v55 = vsel %vm734_vm7, %v1215_v32, %v733_v52  ;;  %v810_v52 = vld [vmem:[%s1709_s7] sm:$0xff] }
 0x2f9   : > { %v636_v0 = vpack.c.bf16 %v621_v62, %v619_v61 }
 0x2fc   : > { %v625_v58 = vpop.f32.mrf.mxu3 }
 0x2fd   : > { %v626_v60 = vadd.f32 %v625_v58, %v592_v54 }
 0x2ff   : > { %v637_v63 = vpack.c.bf16 %v626_v60, %v624_v59 }
 0x301   : > { %685 = vmatpush.bf16.msra.mxu1 %v637_v63  ;;  %1145 = vmatpush.bf16.msra.mxu2 %v637_v63 }
 0x305   : > { %686 = vmatpush.bf16.msra.mxu1 %v636_v0  ;;  %1146 = vmatpush.bf16.msra.mxu2 %v636_v0 }
 0x308   : > { %1116 = vmatmul.msk.bf16.vlgmr.msra.gmra.mxu1 %vm666_vm6, %v1137_v1  ;;  %1118 = vmatmul.msk.bf16.vlgmr.msra.gmra.mxu2 %vm666_vm6, %v1139_v2 }
 0x318   : > { %1117 = vmatmul.msk.bf16.gmra.mxu1 %vm666_vm6, %v1138_v3  ;;  %1119 = vmatmul.msk.bf16.gmra.mxu2 %vm666_vm6, %v1140_v4 }
 0x385   : > { %v688_v5 = vpop.f32.mrf.mxu1 }
 0x386   : > { %v689_v14 = vadd.f32 %v688_v5, %v638_v10 }
 0x388   : > { %v708_v21 = vsel %vm546_vm5, %v689_v14, 0.0 }
 0x38b   : > { %v698_v6 = vpop.f32.mrf.mxu2 }
 0x38c   : > { %v699_v26 = vadd.f32 %v698_v6, %v642_v17 }
 0x38d   : > { %v690_v7 = vpop.f32.mrf.mxu1 }
 0x38e   : > { %v691_v13 = vadd.f32 %v690_v7, %v639_v8  ;;  %v715_v35 = vsel %vm546_vm5, %v699_v26, 0.0 }
 0x390   : > { %v709_v16 = vsel %vm546_vm5, %v691_v13, 0.0 }
 0x391   : > { %v710_v23 = vadd.f32 %v709_v16, %v708_v21 }
 0x393   : > { %v700_v9 = vpop.f32.mrf.mxu2 }
 0x394   : > { %v701_v30 = vadd.f32 %v700_v9, %v643_v24 }
 0x395   : > { %v693_v12 = vpop.f32.mrf.mxu1 }
 0x396   : > { %v694_v15 = vadd.f32 %v693_v12, %v640_v11  ;;  %v717_v39 = vsel %vm546_vm5, %v701_v30, 0.0 }
 0x398   : > { %v711_v22 = vsel %vm546_vm5, %v694_v15, 0.0 }
 0x399   : > { %v712_v28 = vadd.f32 %v711_v22, %v710_v23 }
 0x39b   : > { %v703_v18 = vpop.f32.mrf.mxu2 }
 0x39c   : > { %v704_v36 = vadd.f32 %v703_v18, %v644_v29 }
 0x39d   : > { %v695_v25 = vpop.f32.mrf.mxu1 }
 0x39e   : > { %v696_v27 = vadd.f32 %v695_v25, %v641_v19  ;;  %v719_v43 = vsel %vm546_vm5, %v704_v36, 0.0 }
 0x3a0   : > { %v713_v31 = vsel %vm546_vm5, %v696_v27, 0.0 }
 0x3a1   : > { %v714_v33 = vadd.f32 %v713_v31, %v712_v28 }
 0x3a3   : > { %v716_v37 = vadd.f32 %v715_v35, %v714_v33  ;;  %v705_v38 = vpop.f32.mrf.mxu2 }
 0x3a4   : > { %v706_v40 = vadd.f32 %v705_v38, %v645_v34 }
 0x3a5   : > { %v718_v42 = vadd.f32 %v717_v39, %v716_v37  ;;  %v794_v39 = vld [vmem:[%s1708_s6] sm:$0xff] }
 0x3a6   : > { %v721_v45 = vsel %vm546_vm5, %v706_v40, 0.0 }
 0x3a7   : > { %v720_v44 = vadd.f32 %v719_v43, %v718_v42  ;;  %v797_v43 = vld [vmem:[%s1708_s6 + $0x18] sm:$0xff] }
 0x3a9   : > { %v722_v47 = vadd.f32 %v721_v45, %v720_v44  ;;  %v798_v44 = vld [vmem:[%s1708_s6 + $0x20] sm:$0xff]  ;;  %v799_v45 = vld [vmem:[%s1708_s6 + $0x28] sm:$0xff] }
 0x3ab   : > { %v723_v48 = vrot.slane %v722_v47, 4 }
 0x3ad   : > { %v724_v50 = vadd.f32 %v723_v48, %v722_v47 }
 0x3af   : > { %v725_v51 = vrot.slane %v724_v50, 2 }
 0x3b1   : > { %v726_v53 = vadd.f32 %v725_v51, %v724_v50  ;;  %v800_v50 = vld [vmem:[%s1708_s6 + $0x30] sm:$0xff]  ;;  %v801_v51 = vld [vmem:[%s1708_s6 + $0x38] sm:$0xff] }
 0x3b3   : > { %v727_v54 = vrot.slane %v726_v53, 1 }
 0x3b5   : > { %v728_v56 = vadd.f32 %v727_v54, %v726_v53 }
 0x3b7   : > { %v736_v57 = vmul.f32 %v735_v55, %v728_v56 }
 0x3b9   : > { %v737_v58 = vsub.f32 %v689_v14, %v736_v57  ;;  %v738_v59 = vsub.f32 %v691_v13, %v736_v57  ;;  %v739_v60 = vsub.f32 %v694_v15, %v736_v57  ;;  %v740_v61 = vsub.f32 %v696_v27, %v736_v57 }
 0x3ba   : > { %v741_v62 = vsub.f32 %v699_v26, %v736_v57  ;;  %v742_v2 = vsub.f32 %v701_v30, %v736_v57  ;;  %v743_v7 = vsub.f32 %v704_v36, %v736_v57  ;;  %v744_v11 = vsub.f32 %v706_v40, %v736_v57  ;;  %v795_v40 = vld [vmem:[%s1708_s6 + $0x8] sm:$0xff] }
 0x3bb   : > { %v745_v63 = vmul.f32 %v737_v58, %v737_v58  ;;  %v746_v0 = vmul.f32 %v738_v59, %v738_v59  ;;  %v747_v1 = vmul.f32 %v739_v60, %v739_v60  ;;  %v748_v3 = vmul.f32 %v740_v61, %v740_v61  ;;  %v811_v57 = vld [vmem:[%s1709_s7 + $0x8] sm:$0xff] }
 0x3bc   : > { %v749_v8 = vmul.f32 %v741_v62, %v741_v62  ;;  %v750_v12 = vmul.f32 %v742_v2, %v742_v2  ;;  %v751_v15 = vmul.f32 %v743_v7, %v743_v7  ;;  %v752_v18 = vmul.f32 %v744_v11, %v744_v11 }
 0x3bd   : > { %v753_v4 = vsel %vm546_vm5, %v745_v63, 0.0  ;;  %v754_v5 = vsel %vm546_vm5, %v746_v0, 0.0  ;;  %v756_v9 = vsel %vm546_vm5, %v747_v1, 0.0  ;;  %v758_v13 = vsel %vm546_vm5, %v748_v3, 0.0  ;;  %v815_v1 = vld [vmem:[%s1709_s7 + $0x28] sm:$0xff] }
 0x3be   : > { %v755_v6 = vadd.f32 %v754_v5, %v753_v4  ;;  %v760_v16 = vsel %vm546_vm5, %v749_v8, 0.0  ;;  %v762_v19 = vsel %vm546_vm5, %v750_v12, 0.0  ;;  %v764_v21 = vsel %vm546_vm5, %v751_v15, 0.0 }
 0x3bf   : > { %v766_v23 = vsel %vm546_vm5, %v752_v18, 0.0 }
 0x3c0   : > { %v757_v10 = vadd.f32 %v756_v9, %v755_v6  ;;  %v816_v6 = vld [vmem:[%s1709_s7 + $0x30] sm:$0xff] }
 0x3c2   : > { %v759_v14 = vadd.f32 %v758_v13, %v757_v10 }
 0x3c4   : > { %v761_v17 = vadd.f32 %v760_v16, %v759_v14 }
 0x3c6   : > { %v763_v20 = vadd.f32 %v762_v19, %v761_v17 }
 0x3c8   : > { %v765_v22 = vadd.f32 %v764_v21, %v763_v20 }
 0x3ca   : > { %v767_v24 = vadd.f32 %v766_v23, %v765_v22 }
 0x3cc   : > { %v768_v25 = vrot.slane %v767_v24, 4 }
 0x3ce   : > { %v769_v26 = vadd.f32 %v768_v25, %v767_v24 }
 0x3d0   : > { %v770_v27 = vrot.slane %v769_v26, 2 }
 0x3d2   : > { %v771_v28 = vadd.f32 %v770_v27, %v769_v26 }
 0x3d4   : > { %v772_v29 = vrot.slane %v771_v28, 1 }
 0x3d6   : > { %v773_v30 = vadd.f32 %v772_v29, %v771_v28 }
 0x3d8   : > { %v774_v31 = vmul.f32 %v773_v30, %v735_v55 }
 0x3da   : > { %v775_v32 = vadd.f32 1e-05, %v774_v31 }
 0x3dc   : > { %1216 = vrsqrt.f32 %v775_v32  ;;  %vm782_vm9 = vweird.f32 %v775_v32 }
 0x3e2   : > { %v1217_v33 = vpop.eup %1216 }
 0x3e3   : > { %v777_v34 = vmul.f32 %v1217_v33, %v775_v32  ;;  %vm783_vm8 = vweird.f32 %v1217_v33 }
 0x3e4   : > { %vm784_vm10 = vmor %vm782_vm9, %vm783_vm8 }
 0x3e5   : > { %v778_v35 = vmul.f32 %v1217_v33, %v777_v34 }
 0x3e7   : > { %v779_v36 = vmul.f32 0.5, %v778_v35 }
 0x3e9   : > { %v780_v37 = vsub.f32 1.5, %v779_v36 }
 0x3eb   : > { %v781_v38 = vmul.f32 %v1217_v33, %v780_v37 }
 0x3ed   : > { %v785_v42 = vsel %vm784_vm10, %v1217_v33, %v781_v38 }
 0x3ee   : > { %v786_v46 = vmul.f32 %v785_v42, %v737_v58  ;;  %v787_v47 = vmul.f32 %v785_v42, %v738_v59  ;;  %v788_v48 = vmul.f32 %v785_v42, %v739_v60  ;;  %v789_v49 = vmul.f32 %v785_v42, %v740_v61  ;;  %v812_v58 = vld [vmem:[%s1709_s7 + $0x10] sm:$0xff]  ;;  %v813_v59 = vld [vmem:[%s1709_s7 + $0x18] sm:$0xff] }
 0x3ef   : > { %v790_v53 = vmul.f32 %v785_v42, %v741_v62  ;;  %v791_v54 = vmul.f32 %v785_v42, %v742_v2  ;;  %v792_v55 = vmul.f32 %v785_v42, %v743_v7  ;;  %v793_v56 = vmul.f32 %v785_v42, %v744_v11  ;;  %v814_v62 = vld [vmem:[%s1709_s7 + $0x20] sm:$0xff]  ;;  %v817_v11 = vld [vmem:[%s1709_s7 + $0x38] sm:$0xff] }
 0x3f0   : > { %v802_v60 = vmul.f32 %v794_v39, %v786_v46  ;;  %v803_v61 = vmul.f32 %v795_v40, %v787_v47  ;;  %v804_v63 = vmul.f32 %v796_v41, %v788_v48  ;;  %v805_v0 = vmul.f32 %v797_v43, %v789_v49 }
 0x3f1   : > { %v806_v2 = vmul.f32 %v798_v44, %v790_v53  ;;  %v807_v3 = vmul.f32 %v799_v45, %v791_v54  ;;  %v808_v4 = vmul.f32 %v800_v50, %v792_v55  ;;  %v809_v5 = vmul.f32 %v801_v51, %v793_v56 }
 0x3f2   : > { %v818_v7 = vadd.f32 %v810_v52, %v802_v60  ;;  %v819_v8 = vadd.f32 %v811_v57, %v803_v61  ;;  %v820_v9 = vadd.f32 %v812_v58, %v804_v63  ;;  %v821_v10 = vadd.f32 %v813_v59, %v805_v0 }
 0x3f3   : > { %v822_v12 = vadd.f32 %v814_v62, %v806_v2  ;;  %v823_v13 = vadd.f32 %v815_v1, %v807_v3  ;;  %v824_v17 = vadd.f32 %v816_v6, %v808_v4  ;;  %v825_v19 = vadd.f32 %v817_v11, %v809_v5 }
 0x3f4   : > { %v1120_v14 = vmul.f32 -1.442695, %v818_v7  ;;  %v1121_v15 = vmul.f32 -1.442695, %v819_v8  ;;  %v1122_v16 = vmul.f32 -1.442695, %v820_v9 }
 0x3f5   : > { %v1123_v18 = vmul.f32 -1.442695, %v821_v10  ;;  %v1124_v20 = vmul.f32 -1.442695, %v822_v12  ;;  %v1125_v21 = vmul.f32 -1.442695, %v823_v13 }
 0x3f6   : > { %1218 = vpow2.f32 %v1120_v14  ;;  %v1126_v22 = vmul.f32 -1.442695, %v824_v17  ;;  %v1127_v23 = vmul.f32 -1.442695, %v825_v19 }
 0x3f7   : > { %1220 = vpow2.f32 %v1121_v15 }
 0x3f8   : > { %1222 = vpow2.f32 %v1122_v16 }
 0x3f9   : > { %1224 = vpow2.f32 %v1123_v18 }
 0x3fa   : > { %1226 = vpow2.f32 %v1124_v20 }
 0x3fb   : > { %1228 = vpow2.f32 %v1125_v21 }
 0x3fc   : > { %v1219_v24 = vpop.eup %1218  ;;  %1230 = vpow2.f32 %v1126_v22 }
 0x3fd   : > { %v1221_v25 = vpop.eup %1220  ;;  %v850_v26 = vadd.f32 1.0, %v1219_v24  ;;  %1232 = vpow2.f32 %v1127_v23 }
 0x3fe   : > { %v1223_v27 = vpop.eup %1222  ;;  %v1574_v28 = vadd.f32 1.0, %v1221_v25 }
 0x3ff   : > { %v1225_v29 = vpop.eup %1224  ;;  %v1576_v30 = vadd.f32 1.0, %v1223_v27  ;;  %1234 = vrcp.f32 %v850_v26  ;;  %v867_v35 = vand.u32 2147483647, %v850_v26  ;;  %v869_v36 = vand.u32 2147483648, %v850_v26 }
 0x400   : > { %v1227_v31 = vpop.eup %1226  ;;  %v1578_v32 = vadd.f32 1.0, %v1225_v29  ;;  %1236 = vrcp.f32 %v1574_v28  ;;  %v882_v38 = vand.u32 2147483647, %v1574_v28  ;;  %v884_v41 = vand.u32 2147483648, %v1574_v28 }
 0x401   : > { %v1229_v33 = vpop.eup %1228  ;;  %v1581_v34 = vadd.f32 1.0, %v1227_v31  ;;  %1238 = vrcp.f32 %v1576_v30  ;;  %vm863_vm11 = vweird.f32 %v850_v26  ;;  %vm878_vm12 = vweird.f32 %v1574_v28 }
 0x402   : > { %v1231_v37 = vpop.eup %1230  ;;  %v1585_v40 = vadd.f32 1.0, %v1229_v33  ;;  %1240 = vrcp.f32 %v1578_v32  ;;  %v897_v43 = vand.u32 2147483647, %v1576_v30  ;;  %vm1592_vm13 = vcmp.eq.f32.partialorder %v867_v35, 8.507059e+37 }
 0x403   : > { %v1233_v39 = vpop.eup %1232  ;;  %1242 = vrcp.f32 %v1581_v34  ;;  %v870_v47 = vor.u32 1.1754944e-38, %v869_v36  ;;  %v899_v48 = vand.u32 2147483648, %v1576_v30  ;;  %v1597_v49 = vadd.f32 1.0, %v1231_v37 }
 0x404   : > { %vm1600_vm14 = vcmp.eq.f32.partialorder %v882_v38, 8.507059e+37  ;;  %vm893_vm15 = vweird.f32 %v1576_v30  ;;  %v912_v52 = vand.u32 2147483647, %v1578_v32  ;;  %v1606_v54 = vadd.f32 1.0, %v1233_v39 }
 0x405   : > { %v1235_v42 = vpop.eup %1234  ;;  %v885_v56 = vor.u32 1.1754944e-38, %v884_v41  ;;  %1244 = vrcp.f32 %v1585_v40  ;;  %vm1610_vm1 = vcmp.eq.f32.partialorder %v897_v43, 8.507059e+37  ;;  %vm908_vm2 = vweird.f32 %v1578_v32 }
 0x406   : > { %v1237_v44 = vpop.eup %1236  ;;  %v859_v45 = vmul.f32 %v1235_v42, %v850_v26  ;;  %vm864_vm0 = vweird.f32 %v1235_v42  ;;  %v914_v60 = vand.u32 2147483648, %v1578_v32  ;;  %v900_v0 = vor.u32 1.1754944e-38, %v899_v48 }
 0x407   : > { %v874_v50 = vmul.f32 %v1237_v44, %v1574_v28  ;;  %v1239_v53 = vpop.eup %1238  ;;  %vm879_vm3 = vweird.f32 %v1237_v44  ;;  %vm923_vm4 = vweird.f32 %v1581_v34  ;;  %vm1618_vm6 = vcmp.eq.f32.partialorder %v912_v52, 8.507059e+37  ;;  %vm865_vm7 = vmor %vm863_vm11, %vm864_vm0 }
 0x408   : > { %v860_v55 = vsub.f32 1.0, %v859_v45  ;;  %v889_v58 = vmul.f32 %v1239_v53, %v1576_v30  ;;  %v1241_v61 = vpop.eup %1240  ;;  %v927_v7 = vand.u32 2147483647, %v1581_v34  ;;  %v929_v8 = vand.u32 2147483648, %v1581_v34  ;;  %vm880_vm9 = vmor %vm878_vm12, %vm879_vm3 }
 0x409   : > { %v875_v57 = vsub.f32 1.0, %v874_v50  ;;  %v1243_v62 = vpop.eup %1242  ;;  %v904_v3 = vmul.f32 %v1241_v61, %v1578_v32  ;;  %vm894_vm8 = vweird.f32 %v1239_v53  ;;  %vm909_vm10 = vweird.f32 %v1241_v61 }
 0x40a   : > { %v861_v63 = vmul.f32 %v1235_v42, %v860_v55  ;;  %v890_v2 = vsub.f32 1.0, %v889_v58  ;;  %v919_v6 = vmul.f32 %v1243_v62, %v1581_v34  ;;  %1246 = vrcp.f32 %v1597_v49  ;;  %vm895_vm11 = vmor %vm893_vm15, %vm894_vm8 }
 0x40b   : > { %v876_v1 = vmul.f32 %v1237_v44, %v875_v57  ;;  %v905_v11 = vsub.f32 1.0, %v904_v3  ;;  %v1245_v12 = vpop.eup %1244  ;;  %vm924_vm0 = vweird.f32 %v1243_v62  ;;  %v915_v24 = vor.u32 1.1754944e-38, %v914_v60 }
 0x40c   : > { %v862_v5 = vadd.f32 %v1235_v42, %v861_v63  ;;  %v891_v10 = vmul.f32 %v1239_v53, %v890_v2  ;;  %v920_v14 = vsub.f32 1.0, %v919_v6  ;;  %v934_v21 = vmul.f32 %v1245_v12, %v1585_v40 }
 0x40d   : > { %v877_v9 = vadd.f32 %v1237_v44, %v876_v1  ;;  %v906_v18 = vmul.f32 %v1241_v61, %v905_v11  ;;  %vm1640_vm12 = vcmp.eq.f32.partialorder %v927_v7, 8.507059e+37  ;;  %v930_v28 = vor.u32 1.1754944e-38, %v929_v8 }
 0x40e   : > { %v866_v13 = vsel %vm865_vm7, %v1235_v42, %v862_v5  ;;  %v892_v17 = vadd.f32 %v1239_v53, %v891_v10  ;;  %v921_v20 = vmul.f32 %v1243_v62, %v920_v14  ;;  %v935_v29 = vsub.f32 1.0, %v934_v21 }
 0x40f   : > { %v871_v15 = vsel %vm1592_vm13, %v870_v47, %v866_v13  ;;  %v881_v16 = vsel %vm880_vm9, %v1237_v44, %v877_v9  ;;  %v907_v23 = vadd.f32 %v1241_v61, %v906_v18  ;;  %vm910_vm13 = vmor %vm908_vm2, %vm909_vm10  ;;  %v942_v31 = vand.u32 2147483647, %v1585_v40 }
 0x410   : > { %v886_v19 = vsel %vm1600_vm14, %v885_v56, %v881_v16  ;;  %978 = vst.msk [vmem:[%s1423_s21] sm:$0xff] %vm546_vm5, %v871_v15  ;;  %v896_v22 = vsel %vm895_vm11, %v1239_v53, %v892_v17  ;;  %v922_v27 = vadd.f32 %v1243_v62, %v921_v20  ;;  %vm925_vm14 = vmor %vm923_vm4, %vm924_vm0  ;;  %v944_v33 = vand.u32 2147483648, %v1585_v40  ;;  %v1247_v35 = vpop.eup %1246 }
 0x411   : > { %979 = vst.msk [vmem:[%s1423_s21 + $0x8] sm:$0xff] %vm546_vm5, %v886_v19  ;;  %v901_v26 = vsel %vm1610_vm1, %v900_v0, %v896_v22  ;;  %v911_v30 = vsel %vm910_vm13, %v1241_v61, %v907_v23  ;;  %1248 = vrcp.f32 %v1606_v54  ;;  %v936_v37 = vmul.f32 %v1245_v12, %v935_v29 }
 0x412   : > { %980 = vst.msk [vmem:[%s1423_s21 + $0x10] sm:$0xff] %vm546_vm5, %v901_v26  ;;  %v916_v32 = vsel %vm1618_vm6, %v915_v24, %v911_v30  ;;  %v926_v36 = vsel %vm925_vm14, %v1243_v62, %v922_v27  ;;  %vm939_vm15 = vweird.f32 %v1245_v12  ;;  %v949_v38 = vmul.f32 %v1247_v35, %v1597_v49 }
 0x413   : > { %v931_v34 = vsel %vm1640_vm12, %v930_v28, %v926_v36  ;;  %981 = vst.msk [vmem:[%s1423_s21 + $0x18] sm:$0xff] %vm546_vm5, %v916_v32  ;;  %v937_v39 = vadd.f32 %v1245_v12, %v936_v37  ;;  %vm938_vm1 = vweird.f32 %v1585_v40  ;;  %v945_v41 = vor.u32 1.1754944e-38, %v944_v33 }
 0x414   : > { %982 = vst.msk [vmem:[%s1423_s21 + $0x20] sm:$0xff] %vm546_vm5, %v931_v34  ;;  %vm940_vm2 = vmor %vm938_vm1, %vm939_vm15  ;;  %v950_v42 = vsub.f32 1.0, %v949_v38  ;;  %vm943_vm3 = vcmp.eq.f32.partialorder %v942_v31, 8.507059e+37  ;;  %v959_v44 = vand.u32 2147483648, %v1597_v49  ;;  %vm954_vm4 = vweird.f32 %v1247_v35 }
 0x415   : > { %v941_v43 = vsel %vm940_vm2, %v1245_v12, %v937_v39  ;;  %v957_v48 = vand.u32 2147483647, %v1597_v49  ;;  %vm953_vm6 = vweird.f32 %v1597_v49  ;;  %v974_v55 = vand.u32 2147483648, %v1606_v54 }
 0x416   : > { %v946_v46 = vsel %vm943_vm3, %v945_v41, %v941_v43  ;;  %v951_v47 = vmul.f32 %v1247_v35, %v950_v42  ;;  %vm955_vm7 = vmor %vm953_vm6, %vm954_vm4  ;;  %v960_v51 = vor.u32 1.1754944e-38, %v959_v44  ;;  %v972_v58 = vand.u32 2147483647, %v1606_v54 }
 0x417   : > { %v1249_v45 = vpop.eup %1248  ;;  %983 = vst.msk [vmem:[%s1423_s21 + $0x28] sm:$0xff] %vm546_vm5, %v946_v46  ;;  %vm958_vm8 = vcmp.eq.f32.partialorder %v957_v48, 8.507059e+37  ;;  %vm968_vm10 = vweird.f32 %v1606_v54  ;;  %v975_v49 = vor.u32 1.1754944e-38, %v974_v55 }
 0x418   : > { %v964_v50 = vmul.f32 %v1249_v45, %v1606_v54  ;;  %v952_v40 = vadd.f32 %v1247_v35, %v951_v47  ;;  %vm969_vm9 = vweird.f32 %v1249_v45  ;;  %vm973_vm0 = vcmp.eq.f32.partialorder %v972_v58, 8.507059e+37 }
 0x419   : > { %vm970_vm11 = vmor %vm968_vm10, %vm969_vm9 }
 0x41a   : > { %v965_v52 = vsub.f32 1.0, %v964_v50  ;;  %v956_v53 = vsel %vm955_vm7, %v1247_v35, %v952_v40 }
 0x41b   : > { %v961_v56 = vsel %vm958_vm8, %v960_v51, %v956_v53 }
 0x41c   : > { %v966_v57 = vmul.f32 %v1249_v45, %v965_v52  ;;  %984 = vst.msk [vmem:[%s1423_s21 + $0x30] sm:$0xff] %vm546_vm5, %v961_v56 }
 0x41e   : > { %v967_v59 = vadd.f32 %v1249_v45, %v966_v57 }
 0x420   : > { %v971_v60 = vsel %vm970_vm11, %v1249_v45, %v967_v59 }
 0x421   : > { %v976_v61 = vsel %vm973_vm0, %v975_v49, %v971_v60 }
 0x422   : > { %985 = vst.msk [vmem:[%s1423_s21 + $0x38] sm:$0xff] %vm546_vm5, %v976_v61 }
 0x423 PF: > { %s18_s11 = sadd.s32 1, %s1304_s11   ;;  %s1721_s27 = smov %s1284_s28 }
 0x424   : > { %p15_p13 = scmp.ge.s32.totalorder %s18_s11, 6   ;;  %s1722_s28 = smov %s1406_s18 }
 0x425   : > { %s1723_s29 = smov %s1296_s9  ;;  %s1724_s30 = smov %s1300_s10 }
 0x426   : > { %s1725_s9 = smov %s1728_s12  ;;  %s1726_s10 = smov %s1732_s13 }
 0x427   :  { %17 = sbr.rel (!%p15_p13) target bundleno = 4 (0x4), region = 136 }

</bundles_post_ra>
